<compile_context>
chip_gen: v6e
topology: v6e:2x2x1
jax: 0.10.0
libtpu: 0.0.40
codegen_flags: <defaults>
</compile_context>

<pallas_src>
import functools

import numpy as np
import jax
import jax.numpy as jnp
from jax.experimental import pallas as pl
from jax.experimental.pallas import tpu as pltpu


def _round_up(x, m):
    return ((x + m - 1) // m) * m


# --------------------------------------------------------------------------------------
# One-time parameter fold (call once, cache the result — NOT per forward).
# --------------------------------------------------------------------------------------
def fold_feature_embedder_params(params, *, cat_len, num_dim, feature_dim,
                                 table_dtype=jnp.float32):
    """Fold out_linear into the embedding tables and numeric weight.

    Returns (tensors, meta): tensors are device arrays consumed by the kernel, meta is
    static Python data (segment offsets / padded sizes) used to build the kernel.
    table_dtype=jnp.bfloat16 runs the big gather-matmul at full MXU rate (largest win on
    v5e) at ~1e-3 relative error; default float32 keeps exact-match accuracy.
    """
    emb_tables = params["emb_tables"]                 # list of (vocab_i, emb_dim_i)
    w_num, b_num = params["w_num"], params["b_num"]   # (num_dim, num_dim), (1, num_dim)
    w_out, b_out = params["w_out"], params["b_out"]   # (cat_out+num_dim, feat), (1, feat)

    vocab_sizes = [int(t.shape[0]) for t in emb_tables]
    emb_dims = [int(t.shape[1]) for t in emb_tables]
    row_off = np.concatenate([[0], np.cumsum(emb_dims)]).astype(int)   # rows of w_out
    feat_pad = _round_up(feature_dim, 128)

    segs, seg_meta, off = [], [], 0
    for i in range(cat_len):
        vp = _round_up(vocab_sizes[i], 128)           # 128-pad each segment (lane-dense K)
        seg = emb_tables[i] @ w_out[row_off[i]:row_off[i + 1], :]      # (vocab_i, feat)
        seg = jnp.pad(seg, ((0, vp - vocab_sizes[i]), (0, feat_pad - feature_dim)))
        segs.append(seg.astype(table_dtype))
        seg_meta.append((off, vp))
        off += vp

    table = jnp.concatenate(segs, axis=0)             # (sum(vp_i), feat_pad)
    w_out_num = w_out[row_off[-1]:, :]                # (num_dim, feature_dim)
    w_num_f = jnp.pad(w_num @ w_out_num, ((0, 0), (0, feat_pad - feature_dim)))
    bias_f = jnp.pad(b_num @ w_out_num + b_out, ((0, 0), (0, feat_pad - feature_dim)))

    tensors = {
        "table": table,
        "w_num": w_num_f.astype(jnp.float32),
        "bias": bias_f.astype(jnp.float32),
        "vocab_sizes": jnp.asarray(vocab_sizes, jnp.int32),
    }
    meta = {
        "cat_len": cat_len,
        "num_dim": num_dim,
        "feature_dim": feature_dim,
        "feat_pad": feat_pad,
        "segments": tuple(seg_meta),                  # static (offset, padded_vocab) pairs
    }
    return tensors, meta


# --------------------------------------------------------------------------------------
# Kernel
# --------------------------------------------------------------------------------------
def _make_kernel(segments):
    """Fused kernel: per-segment one-hot gather-matmuls + numeric matmul + bias."""

    def kernel(ids_ref, num_ref, table_ref, wnum_ref, bias_ref, out_ref):
        ids = ids_ref[...]                            # (TM, cat_len) int32, per-column ids
        tm = ids.shape[0]
        tdt = table_ref.dtype

        # Folded numeric projection: num_x @ (W_num @ W_out_num).
        acc = jnp.dot(num_ref[...], wnum_ref[...], preferred_element_type=jnp.float32)

        # One small one-hot matmul per categorical column, restricted to its own
        # 128-padded vocab segment (VPU work ~cat_len x lower than a stacked multi-hot;
        # no full-width f32 add chain; small live one-hot tiles).
        for i, (off, vp) in enumerate(segments):
            iota = jax.lax.broadcasted_iota(jnp.int32, (tm, vp), 1)
            onehot = (ids[:, i][:, None] == iota).astype(tdt)
            acc = acc + jnp.dot(onehot, table_ref[pl.ds(off, vp), :],
                                preferred_element_type=jnp.float32)

        out_ref[...] = (acc + bias_ref[...]).astype(out_ref.dtype)

    return kernel


# --------------------------------------------------------------------------------------
# Forward wrapper
# --------------------------------------------------------------------------------------
def feature_embedder_pallas(x, folded, *, tm=None):
    """x: (B, S, cat_len + num_dim) float32 -> (B, S, feature_dim) float32."""
    tensors, meta = folded
    cat_len = meta["cat_len"]
    num_dim = meta["num_dim"]
    feature_dim = meta["feature_dim"]
    feat_pad = meta["feat_pad"]
    segments = meta["segments"]

    B, S, F = x.shape
    assert F == cat_len + num_dim
    tokens = B * S

    # Token tile: big enough to amortize per-step overhead, small enough that tiny
    # batches don't over-pad and v7x's two TensorCores both get at least one step.
    if tm is None:
        tm = min(1024, _round_up(max(tokens, 1), 256))
        if tokens > 256:
            tm = min(tm, max(256, _round_up(-(-tokens // 2), 256)))
    tokens_pad = _round_up(tokens, tm)

    # Wrapper-side input split: int32 id slab + clean float32 numeric slab.
    # TODO(synk): A/B moving this split in-kernel (static pl.ds lane slices on the raw
    # (tokens, F) block) to save one HBM round trip over the input.
    cat_ids = x[..., :cat_len].astype(jnp.int32).reshape(tokens, cat_len)
    cat_ids = jnp.clip(cat_ids, 0, tensors["vocab_sizes"] - 1)   # nn.Embedding would raise
    num_x = x[..., cat_len:].reshape(tokens, num_dim).astype(jnp.float32)
    if tokens_pad != tokens:
        cat_ids = jnp.pad(cat_ids, ((0, tokens_pad - tokens), (0, 0)))
        num_x = jnp.pad(num_x, ((0, tokens_pad - tokens), (0, 0)))

    table, w_num_f, bias_f = tensors["table"], tensors["w_num"], tensors["bias"]

    # Scoped VMEM sized from the actual working set (double-buffered tiles + resident
    # weights), bounded by v7x's 64 MiB physical VMEM.
    const_bytes = (table.size * table.dtype.itemsize
                   + w_num_f.size * 4 + bias_f.size * 4)
    tile_bytes = tm * (cat_len * 4 + num_dim * 4 + feat_pad * 4)
    vmem_need = 2 * (const_bytes + tile_bytes)
    vmem_limit = int(min(max(2 * vmem_need, 32 * 1024 * 1024), 64 * 1024 * 1024))

    kernel = _make_kernel(segments)
    full_spec = lambda arr: pl.BlockSpec(arr.shape, lambda i: (0,) * arr.ndim)

    out = pl.pallas_call(
        kernel,
        out_shape=jax.ShapeDtypeStruct((tokens_pad, feat_pad), jnp.float32),
        grid_spec=pltpu.PrefetchScalarGridSpec(
            num_scalar_prefetch=0,
            grid=(tokens_pad // tm,),
            in_specs=[
                pl.BlockSpec((tm, cat_len), lambda i: (i, 0)),
                pl.BlockSpec((tm, num_dim), lambda i: (i, 0)),
                full_spec(table),
                full_spec(w_num_f),
                full_spec(bias_f),
            ],
            out_specs=pl.BlockSpec((tm, feat_pad), lambda i: (i, 0)),
        ),
        compiler_params=pltpu.CompilerParams(
            dimension_semantics=("parallel",),
            vmem_limit_bytes=vmem_limit),
    )(cat_ids, num_x, table, w_num_f, bias_f)

    if tokens_pad == tokens and feat_pad == feature_dim:
        return out.reshape(B, S, feature_dim)
    return out[:tokens, :feature_dim].reshape(B, S, feature_dim)


# --------------------------------------------------------------------------------------
# Pure-JAX reference mirroring the PyTorch forward (unfolded)
# --------------------------------------------------------------------------------------
def feature_embedder_ref(x, params, *, cat_len, num_dim, feature_dim):
    cat_x = x[..., :cat_len].astype(jnp.int32)
    num_x = x[..., cat_len:]
    embs = [jnp.take(params["emb_tables"][i], cat_x[..., i], axis=0)
            for i in range(cat_len)]
    cat_emb = jnp.concatenate(embs, axis=-1)
    num_emb = num_x @ params["w_num"] + params["b_num"][0]
    h = jnp.concatenate([cat_emb, num_emb], axis=-1)
    return h @ params["w_out"] + params["b_out"][0]


def init_params(key, cat_unique, cat_cols, cat_emb_dim, num_dim, feature_dim):
    """Deterministic synthetic init matching the shapes from FeatureEmbedder.__init__."""
    keys = jax.random.split(key, len(cat_cols) + 4)
    emb_tables = []
    emb_dims = []
    for i, c in enumerate(cat_cols):
        unique_count = cat_unique[c]
        emb_dim_real = min(cat_emb_dim, unique_count // 2 + 1)
        emb_dim_real = max(emb_dim_real, 4)
        emb_dims.append(emb_dim_real)
        emb_tables.append(
            jax.random.normal(keys[i], (unique_count, emb_dim_real), jnp.float32))
    cat_out_dim = sum(emb_dims)
    # Linear weights stored pre-transposed: (in, out).
    w_num = jax.random.normal(keys[-4], (num_dim, num_dim), jnp.float32) * 0.1
    b_num = jax.random.normal(keys[-3], (1, num_dim), jnp.float32) * 0.1
    w_out = jax.random.normal(keys[-2], (cat_out_dim + num_dim, feature_dim),
                              jnp.float32) * 0.1
    b_out = jax.random.normal(keys[-1], (1, feature_dim), jnp.float32) * 0.1
    return {"emb_tables": emb_tables, "w_num": w_num, "b_num": b_num,
            "w_out": w_out, "b_out": b_out}


if __name__ == "__main__":
    # Small config consistent with the module defaults (num_dim reduced for a small demo).
    cat_cols = ["c0", "c1", "c2"]
    cat_unique = {"c0": 10, "c1": 7, "c2": 30}   # emb dims -> 6, 4, 16 (cat_out_dim = 26)
    cat_emb_dim = 16
    num_dim = 50
    feature_dim = 32
    cat_len = len(cat_cols)

    B, S = 2, 8
    key = jax.random.PRNGKey(0)
    k_param, k_cat, k_num = jax.random.split(key, 3)

    params = init_params(k_param, cat_unique, cat_cols, cat_emb_dim, num_dim, feature_dim)

    # Build input: categorical ids (as floats) in the leading columns, numeric after.
    cat_ids = jnp.stack(
        [jax.random.randint(jax.random.fold_in(k_cat, i), (B, S), 0, cat_unique[c])
         for i, c in enumerate(cat_cols)], axis=-1).astype(jnp.float32)
    num_feats = jax.random.normal(k_num, (B, S, num_dim), jnp.float32)
    x = jnp.concatenate([cat_ids, num_feats], axis=-1)   # (2, 8, 53)

    # Fold out_linear into the tables / numeric weight ONCE; reuse across forwards.
    folded = fold_feature_embedder_params(
        params, cat_len=cat_len, num_dim=num_dim, feature_dim=feature_dim)

    run = functools.partial(feature_embedder_pallas, folded=folded)
    out = jax.block_until_ready(run(x))

    ref = feature_embedder_ref(x, params, cat_len=cat_len, num_dim=num_dim,
                               feature_dim=feature_dim)
    assert out.shape == (B, S, feature_dim)
    assert jnp.allclose(out, ref, atol=1e-4, rtol=1e-4), "mismatch vs reference"
    print("KERNEL_OK")
</pallas_src>

<mosaic_0001>
module attributes {stable_mosaic.version = 11 : i64} {
  func.func @kernel(%arg0: i32, %arg1: memref<256x3xi32, #tpu.memory_space<vmem>>, %arg2: memref<256x50xf32, #tpu.memory_space<vmem>>, %arg3: memref<384x128xf32, #tpu.memory_space<vmem>>, %arg4: memref<50x128xf32, #tpu.memory_space<vmem>>, %arg5: memref<1x128xf32, #tpu.memory_space<vmem>>, %arg6: memref<256x128xf32, #tpu.memory_space<vmem>>) attributes {dimension_semantics = [#tpu.dimension_semantics<parallel>], iteration_bounds = array<i64: 1>, scalar_prefetch = 0 : i64, scratch_operands = 0 : i64, tpu.core_type = #tpu.core_type<tc>, window_params = [{transform_indices = @transform_0, window_bounds = array<i64: 256, 3>}, {transform_indices = @transform_1, window_bounds = array<i64: 256, 50>}, {pipeline_mode = #tpu.pipeline_mode<synchronous>, transform_indices = @transform_2, window_bounds = array<i64: 384, 128>}, {pipeline_mode = #tpu.pipeline_mode<synchronous>, transform_indices = @transform_3, window_bounds = array<i64: 50, 128>}, {pipeline_mode = #tpu.pipeline_mode<synchronous>, transform_indices = @transform_4, window_bounds = array<i64: 1, 128>}, {transform_indices = @transform_5, window_bounds = array<i64: 256, 128>}]} {
    %c0 = arith.constant 0 : index
    %c0_0 = arith.constant 0 : index
    %0 = vector.load %arg1[%c0, %c0_0] : memref<256x3xi32, #tpu.memory_space<vmem>>, vector<256x3xi32>
    %c0_1 = arith.constant 0 : index
    %c0_2 = arith.constant 0 : index
    %1 = vector.load %arg2[%c0_1, %c0_2] : memref<256x50xf32, #tpu.memory_space<vmem>>, vector<256x50xf32>
    %c0_3 = arith.constant 0 : index
    %c0_4 = arith.constant 0 : index
    %2 = vector.load %arg4[%c0_3, %c0_4] : memref<50x128xf32, #tpu.memory_space<vmem>>, vector<50x128xf32>
    %cst = arith.constant dense<0.000000e+00> : vector<256x128xf32>
    %3 = tpu.matmul %1, %2, %cst {dimension_numbers = #tpu.dot_dimension_numbers<[1], [0], [0], [1], [0, 0, 1, 1], [], []>} : vector<256x50xf32>, vector<50x128xf32>, vector<256x128xf32> -> vector<256x128xf32>
    %4 = tpu.iota {dimensions = array<i32: 1>} : vector<256x128xi32>
    %5 = vector.extract_strided_slice %0 {offsets = [0, 0], sizes = [256, 1], strides = [1, 1]} : vector<256x3xi32> to vector<256x1xi32>
    %6 = vector.shape_cast %5 : vector<256x1xi32> to vector<256xi32>
    %7 = vector.shape_cast %6 : vector<256xi32> to vector<256x1xi32>
    %8 = vector.broadcast %7 : vector<256x1xi32> to vector<256x128xi32>
    %9 = arith.cmpi eq, %8, %4 : vector<256x128xi32>
    %10 = arith.extui %9 : vector<256x128xi1> to vector<256x128xi32>
    %11 = arith.sitofp %10 : vector<256x128xi32> to vector<256x128xf32>
    %c0_5 = arith.constant 0 : index
    %c0_6 = arith.constant 0 : index
    %12 = vector.load %arg3[%c0_5, %c0_6] : memref<384x128xf32, #tpu.memory_space<vmem>>, vector<128x128xf32>
    %cst_7 = arith.constant dense<0.000000e+00> : vector<256x128xf32>
    %13 = tpu.matmul %11, %12, %cst_7 {dimension_numbers = #tpu.dot_dimension_numbers<[1], [0], [0], [1], [0, 0, 1, 1], [], []>} : vector<256x128xf32>, vector<128x128xf32>, vector<256x128xf32> -> vector<256x128xf32>
    %14 = arith.addf %3, %13 : vector<256x128xf32>
    %15 = tpu.iota {dimensions = array<i32: 1>} : vector<256x128xi32>
    %16 = vector.extract_strided_slice %0 {offsets = [0, 1], sizes = [256, 1], strides = [1, 1]} : vector<256x3xi32> to vector<256x1xi32>
    %17 = vector.shape_cast %16 : vector<256x1xi32> to vector<256xi32>
    %18 = vector.shape_cast %17 : vector<256xi32> to vector<256x1xi32>
    %19 = vector.broadcast %18 : vector<256x1xi32> to vector<256x128xi32>
    %20 = arith.cmpi eq, %19, %15 : vector<256x128xi32>
    %21 = arith.extui %20 : vector<256x128xi1> to vector<256x128xi32>
    %22 = arith.sitofp %21 : vector<256x128xi32> to vector<256x128xf32>
    %c128 = arith.constant 128 : index
    %c0_8 = arith.constant 0 : index
    %23 = vector.load %arg3[%c128, %c0_8] : memref<384x128xf32, #tpu.memory_space<vmem>>, vector<128x128xf32>
    %cst_9 = arith.constant dense<0.000000e+00> : vector<256x128xf32>
    %24 = tpu.matmul %22, %23, %cst_9 {dimension_numbers = #tpu.dot_dimension_numbers<[1], [0], [0], [1], [0, 0, 1, 1], [], []>} : vector<256x128xf32>, vector<128x128xf32>, vector<256x128xf32> -> vector<256x128xf32>
    %25 = arith.addf %14, %24 : vector<256x128xf32>
    %26 = tpu.iota {dimensions = array<i32: 1>} : vector<256x128xi32>
    %27 = vector.extract_strided_slice %0 {offsets = [0, 2], sizes = [256, 1], strides = [1, 1]} : vector<256x3xi32> to vector<256x1xi32>
    %28 = vector.shape_cast %27 : vector<256x1xi32> to vector<256xi32>
    %29 = vector.shape_cast %28 : vector<256xi32> to vector<256x1xi32>
    %30 = vector.broadcast %29 : vector<256x1xi32> to vector<256x128xi32>
    %31 = arith.cmpi eq, %30, %26 : vector<256x128xi32>
    %32 = arith.extui %31 : vector<256x128xi1> to vector<256x128xi32>
    %33 = arith.sitofp %32 : vector<256x128xi32> to vector<256x128xf32>
    %c256 = arith.constant 256 : index
    %c0_10 = arith.constant 0 : index
    %34 = vector.load %arg3[%c256, %c0_10] : memref<384x128xf32, #tpu.memory_space<vmem>>, vector<128x128xf32>
    %cst_11 = arith.constant dense<0.000000e+00> : vector<256x128xf32>
    %35 = tpu.matmul %33, %34, %cst_11 {dimension_numbers = #tpu.dot_dimension_numbers<[1], [0], [0], [1], [0, 0, 1, 1], [], []>} : vector<256x128xf32>, vector<128x128xf32>, vector<256x128xf32> -> vector<256x128xf32>
    %36 = arith.addf %25, %35 : vector<256x128xf32>
    %c0_12 = arith.constant 0 : index
    %c0_13 = arith.constant 0 : index
    %37 = vector.load %arg5[%c0_12, %c0_13] : memref<1x128xf32, #tpu.memory_space<vmem>>, vector<1x128xf32>
    %38 = vector.broadcast %37 : vector<1x128xf32> to vector<256x128xf32>
    %39 = arith.addf %36, %38 : vector<256x128xf32>
    %c0_14 = arith.constant 0 : index
    %c0_15 = arith.constant 0 : index
    %40 = vector.load %arg6[%c0_14, %c0_15] : memref<256x128xf32, #tpu.memory_space<vmem>>, vector<256x128xf32>
    tpu.vector_store %arg6[%c0_14, %c0_15], %39 {strides = array<i32>} : memref<256x128xf32, #tpu.memory_space<vmem>>, vector<256x128xf32>,
    return
  }
  func.func @transform_0(%arg0: i32) -> (i32, i32) {
    %c0_i32 = arith.constant 0 : i32
    %c0_i32_0 = arith.constant 0 : i32
    return %arg0, %c0_i32 : i32, i32
  }
  func.func @transform_1(%arg0: i32) -> (i32, i32) {
    %c0_i32 = arith.constant 0 : i32
    %c0_i32_0 = arith.constant 0 : i32
    return %arg0, %c0_i32 : i32, i32
  }
  func.func @transform_2(%arg0: i32) -> (i32, i32) {
    %c0_i32 = arith.constant 0 : i32
    %c0_i32_0 = arith.constant 0 : i32
    %c0_i32_1 = arith.constant 0 : i32
    return %c0_i32, %c0_i32_0 : i32, i32
  }
  func.func @transform_3(%arg0: i32) -> (i32, i32) {
    %c0_i32 = arith.constant 0 : i32
    %c0_i32_0 = arith.constant 0 : i32
    %c0_i32_1 = arith.constant 0 : i32
    return %c0_i32, %c0_i32_0 : i32, i32
  }
  func.func @transform_4(%arg0: i32) -> (i32, i32) {
    %c0_i32 = arith.constant 0 : i32
    %c0_i32_0 = arith.constant 0 : i32
    %c0_i32_1 = arith.constant 0 : i32
    return %c0_i32, %c0_i32_0 : i32, i32
  }
  func.func @transform_5(%arg0: i32) -> (i32, i32) {
    %c0_i32 = arith.constant 0 : i32
    %c0_i32_0 = arith.constant 0 : i32
    return %arg0, %c0_i32 : i32, i32
  }
}

</mosaic_0001>

<bundles_post_ra>
// kernel: tpu_custom_call.1
= control target key start
LH: loop header
LB: loop body
LE: loop exit
PB: predicated region body
PF: predicated region fallthrough
CT: control target
= control target key end

     0   :  { %v2665_v2 = vmov 0   ;;  %vm624_vm0 = vcmask 1041408   ;;  %s3797_s0 = inlined_call_operand.vmem [shape: s32[256,3], index: 0, kind: input, shape index: {}]   ;;  %s3798_s1 = inlined_call_operand.vmem [shape: f32[256,50], index: 1, kind: input, shape index: {}]   ;;  %s3799_s2 = inlined_call_operand.vmem [shape: f32[384,128], index: 2, kind: input, shape index: {}]   ;;  %s3800_s3 = inlined_call_operand.vmem [shape: f32[50,128], index: 3, kind: input, shape index: {}]   ;;  %s3801_s4 = inlined_call_operand.vmem [shape: f32[1,128], index: 4, kind: input, shape index: {}]   ;;  %s3802_s5 = inlined_call_operand.hbm [shape: f32[256,128], index: 5, kind: output, shape index: {}]  }
   0x1   :  { %v2705_v0 = vld [vmem:[%s3797_s0 + $0x10] sm:$0xff]  ;;  %v2710_v1 = vld [vmem:[%s3797_s0] sm:$0xff]  ;;  %2621 = vset.pattern.permute.xlu1 %v2665_v2  ;;  %2620 = vset.pattern.permute.xlu0 %v2665_v2  ;;  %v2717_v3 = vld [vmem:[%s3797_s0 + $0x18] sm:$0xff] }
   0x2   :  { %101 = vperm.xlu1 %2621, %v2705_v0   ;;  %95 = vperm.xlu0 %2620, %v2710_v1   ;;  %v2722_v4 = vld [vmem:[%s3797_s0 + $0x8] sm:$0xff]  ;;  %v2734_v6 = vld [vmem:[%s3797_s0 + $0x20] sm:$0xff]  ;;  %v2741_v7 = vld [vmem:[%s3797_s0 + $0x38] sm:$0xff] }
   0x3   :  { %v2729_v5 = vld [vmem:[%s3797_s0 + $0x28] sm:$0xff]  ;;  %v301_v8 = vld [vmem:[%s3799_s2 + $0x78] sm:$0xff]  ;;  %v2749_v9 = vld [vmem:[%s3797_s0 + $0x30] sm:$0xff] }
   0x4   :  { %2279 = vmatprep.subr.mxu0 %v301_v8  ;;  %v300_v10 = vld [vmem:[%s3799_s2 + $0x70] sm:$0xff]  ;;  %v90_v12 = vld [vmem:[%s3800_s3 + $0x28] sm:$0xff]  ;;  %v89_v14 = vld [vmem:[%s3800_s3 + $0x20] sm:$0xff] }
   0x5   :  { %v91_v11 = vld [vmem:[%s3800_s3 + $0x30] sm:$0x3]  ;;  %2280 = vmatpush3.msra.mxu0 %v301_v8  ;;  %v299_v13 = vld [vmem:[%s3799_s2 + $0x68] sm:$0xff]  ;;  %v2776_v16 = vld [vmem:[%s3797_s0 + $0x40] sm:$0xff] }
   0x6   :  { %104 = vperm.xlu1 %2621, %v2717_v3   ;;  %98 = vperm.xlu0 %2620, %v2722_v4   ;;  %v2771_v15 = vld [vmem:[%s3797_s0 + $0x48] sm:$0xff]  ;;  %v298_v17 = vld [vmem:[%s3799_s2 + $0x60] sm:$0xff]  ;;  %v88_v18 = vld [vmem:[%s3800_s3 + $0x18] sm:$0xff] }
   0x7   :  { %2359 = vmatprep.subr.msk.mxu1 %vm624_vm0, %v91_v11  ;;  %2281 = vmatprep.subr.mxu0 %v300_v10  ;;  %v297_v19 = vld [vmem:[%s3799_s2 + $0x58] sm:$0xff]  ;;  %v2797_v21 = vld [vmem:[%s3797_s0 + $0x50] sm:$0xff]  ;;  %v86_v24 = vld [vmem:[%s3800_s3 + $0x8] sm:$0xff] }
   0x8   :  { %2360 = vmatpush3.msk.msra.mxu1 %vm624_vm0, %v91_v11  ;;  %2282 = vmatpush3.msra.mxu0 %v300_v10  ;;  %v2792_v20 = vld [vmem:[%s3797_s0 + $0x58] sm:$0xff]  ;;  %v87_v22 = vld [vmem:[%s3800_s3 + $0x10] sm:$0xff]  ;;  %v2813_v25 = vld [vmem:[%s3797_s0 + $0x68] sm:$0xff] }
   0x9   :  { %2361 = vmatprep.subr.mxu1 %v90_v12  ;;  %2283 = vmatprep.subr.mxu0 %v299_v13  ;;  %v296_v23 = vld [vmem:[%s3799_s2 + $0x50] sm:$0xff]  ;;  %v2818_v26 = vld [vmem:[%s3797_s0 + $0x60] sm:$0xff]  ;;  %v295_v27 = vld [vmem:[%s3799_s2 + $0x48] sm:$0xff] }
   0xa   :  { %110 = vperm.xlu1 %2621, %v2729_v5   ;;  %107 = vperm.xlu0 %2620, %v2734_v6   ;;  %v85_v28 = vld [vmem:[%s3800_s3] sm:$0xff]  ;;  %v2834_v30 = vld [vmem:[%s3797_s0 + $0x78] sm:$0xff]  ;;  %v2839_v31 = vld [vmem:[%s3797_s0 + $0x70] sm:$0xff] }
   0xb   :  { %2362 = vmatpush3.msra.mxu1 %v90_v12  ;;  %2284 = vmatpush3.msra.mxu0 %v299_v13  ;;  %v294_v29 = vld [vmem:[%s3799_s2 + $0x40] sm:$0xff] }
   0xc   :  { %2363 = vmatprep.subr.mxu1 %v89_v14  ;;  %2285 = vmatprep.subr.mxu0 %v298_v17 }
   0xd   :  { %2364 = vmatpush3.msra.mxu1 %v89_v14  ;;  %2286 = vmatpush3.msra.mxu0 %v298_v17 }
   0xe   :  { %116 = vperm.xlu1 %2621, %v2741_v7   ;;  %113 = vperm.xlu0 %2620, %v2749_v9  }
   0xf   :  { %2365 = vmatprep.subr.mxu1 %v88_v18  ;;  %2287 = vmatprep.subr.mxu0 %v297_v19 }
  0x10   :  { %2366 = vmatpush3.msra.mxu1 %v88_v18  ;;  %2288 = vmatpush3.msra.mxu0 %v297_v19 }
  0x11   :  { %2367 = vmatprep.subr.mxu1 %v87_v22  ;;  %2289 = vmatprep.subr.mxu0 %v296_v23 }
  0x12   :  { %122 = vperm.xlu1 %2621, %v2771_v15   ;;  %119 = vperm.xlu0 %2620, %v2776_v16  }
  0x13   :  { %2368 = vmatpush3.msra.mxu1 %v87_v22  ;;  %2290 = vmatpush3.msra.mxu0 %v296_v23 }
  0x14   :  { %2369 = vmatprep.subr.mxu1 %v86_v24  ;;  %2291 = vmatprep.subr.mxu0 %v295_v27 }
  0x15   :  { %2370 = vmatpush3.msra.mxu1 %v86_v24 }
  0x16   :  { %128 = vperm.xlu1 %2621, %v2792_v20   ;;  %125 = vperm.xlu0 %2620, %v2797_v21  }
  0x1a   :  { %134 = vperm.xlu1 %2621, %v2813_v25   ;;  %131 = vperm.xlu0 %2620, %v2818_v26  }
  0x1b   :  { %10 = vsyncpa [#allocation3], 0  ;;  %2292 = vmatpush3.msra.mxu0 %v295_v27  ;;  %2371 = vmatprep.subr.mxu1 %v85_v28  ;;  %v53_v32 = vld [vmem:[%s3798_s1] sm:$0xff]  ;;  %vm527_vm1 = vcmask 408576   ;;  %v293_v33 = vld [vmem:[%s3799_s2 + $0x38] sm:$0xff]  ;;  %v2666_v63 = vmov 1  }
  0x1c   :  { %2293 = vmatprep.subr.mxu0 %v294_v29  ;;  %2372 = vmatpush3.msra.mxu1 %v85_v28  ;;  %v54_v34 = vld [vmem:[%s3798_s1 + $0x8] sm:$0xff]  ;;  %v55_v35 = vld [vmem:[%s3798_s1 + $0x10] sm:$0xff]  ;;  %v2863_v37 = vld [vmem:[%s3797_s0 + $0x80] sm:$0xff] }
  0x1d   :  { %v2858_v36 = vld [vmem:[%s3797_s0 + $0x88] sm:$0xff]  ;;  %2294 = vmatpush3.msra.mxu0 %v294_v29  ;;  %2373 = vmatprep.mubr.msk.f32.mxu1 %vm527_vm1, %v53_v32  ;;  %v292_v38 = vld [vmem:[%s3799_s2 + $0x30] sm:$0xff]  ;;  %v1060_v39 = vld [vmem:[%s3799_s2 + $0xf8] sm:$0xff] }
  0x1e   :  { %140 = vperm.xlu1 %2621, %v2834_v30   ;;  %137 = vperm.xlu0 %2620, %v2839_v31   ;;  %v56_v40 = vld [vmem:[%s3798_s1 + $0x18] sm:$0xff]  ;;  %v291_v41 = vld [vmem:[%s3799_s2 + $0x28] sm:$0xff]  ;;  %v57_v42 = vld [vmem:[%s3798_s1 + $0x20] sm:$0xff] }
  0x1f   :  { %2295 = vmatprep.subr.mxu0 %v293_v33  ;;  %2374 = vmatmul.mubr.msk.f32.vlgmr.msra.gmra.mxu1 %vm527_vm1, %v54_v34  ;;  %v2888_v43 = vld [vmem:[%s3797_s0 + $0x98] sm:$0xff]  ;;  %v2893_v44 = vld [vmem:[%s3797_s0 + $0x90] sm:$0xff]  ;;  %v290_v45 = vld [vmem:[%s3799_s2 + $0x20] sm:$0xff] }
  0x20   :  { %2296 = vmatpush3.msra.mxu0 %v293_v33  ;;  %2376 = vmatprep.mubr.msk.f32.mxu1 %vm527_vm1, %v55_v35  ;;  %v58_v46 = vld [vmem:[%s3798_s1 + $0x28] sm:$0xff]  ;;  %v59_v47 = vld [vmem:[%s3798_s1 + $0x30] sm:$0xff]  ;;  %v2916_v49 = vld [vmem:[%s3797_s0 + $0xa0] sm:$0xff] }
  0x21   :  { %2297 = vmatprep.subr.mxu0 %v292_v38  ;;  %2421 = vmatprep.subr.mxu1 %v1060_v39  ;;  %v2911_v48 = vld [vmem:[%s3797_s0 + $0xa8] sm:$0xff]  ;;  %v289_v50 = vld [vmem:[%s3799_s2 + $0x18] sm:$0xff]  ;;  %v1059_v51 = vld [vmem:[%s3799_s2 + $0xf0] sm:$0xff] }
  0x22   :  { %146 = vperm.xlu1 %2621, %v2858_v36   ;;  %143 = vperm.xlu0 %2620, %v2863_v37   ;;  %v60_v52 = vld [vmem:[%s3798_s1 + $0x38] sm:$0xff]  ;;  %v288_v53 = vld [vmem:[%s3799_s2 + $0x10] sm:$0xff]  ;;  %v61_v54 = vld [vmem:[%s3798_s1 + $0x40] sm:$0xff] }
  0x23   :  { %2298 = vmatpush3.msra.mxu0 %v292_v38  ;;  %2377 = vmatmul.mubr.msk.f32.gmra.mxu1 %vm527_vm1, %v56_v40  ;;  %v2940_v55 = vld [vmem:[%s3797_s0 + $0xb8] sm:$0xff]  ;;  %v2945_v56 = vld [vmem:[%s3797_s0 + $0xb0] sm:$0xff]  ;;  %v287_v57 = vld [vmem:[%s3799_s2 + $0x8] sm:$0xff] }
  0x24   :  { %2299 = vmatprep.subr.mxu0 %v291_v41  ;;  %2379 = vmatprep.mubr.msk.f32.mxu1 %vm527_vm1, %v57_v42  ;;  %v62_v58 = vld [vmem:[%s3798_s1 + $0x48] sm:$0xff]  ;;  %v63_v59 = vld [vmem:[%s3798_s1 + $0x50] sm:$0xff]  ;;  %v2963_v60 = vld [vmem:[%s3797_s0 + $0xc0] sm:$0xff] }
  0x25   :  { %2300 = vmatpush3.msra.mxu0 %v291_v41  ;;  %2422 = vmatpush3.msra.mxu1 %v1060_v39  ;;  %v286_v61 = vld [vmem:[%s3799_s2] sm:$0xff]  ;;  %v64_v62 = vld [vmem:[%s3798_s1 + $0x58] sm:$0xff]  ;;  %v1058_v8 = vld [vmem:[%s3799_s2 + $0xe8] sm:$0xff] }
  0x26   :  { %152 = vperm.xlu1 %2621, %v2888_v43   ;;  %149 = vperm.xlu0 %2620, %v2893_v44   ;;  %v65_v2 = vld [vmem:[%s3798_s1 + $0x60] sm:$0xff]  ;;  %v2985_v10 = vld [vmem:[%s3797_s0 + $0xc8] sm:$0xff]  ;;  %v2998_v13 = vld [vmem:[%s3799_s2 + $0x178] sm:$0xff] }
  0x27   :  { %2301 = vmatprep.subr.mxu0 %v290_v45  ;;  %2380 = vmatmul.mubr.msk.f32.gmra.mxu1 %vm527_vm1, %v58_v46  ;;  %v1057_v11 = vld [vmem:[%s3799_s2 + $0xe0] sm:$0xff]  ;;  %v66_v12 = vld [vmem:[%s3798_s1 + $0x68] sm:$0xff]  ;;  %v67_v14 = vld [vmem:[%s3798_s1 + $0x70] sm:$0xff] }
  0x28   :  { %2302 = vmatpush3.msra.mxu0 %v290_v45  ;;  %2382 = vmatprep.mubr.msk.f32.mxu1 %vm527_vm1, %v59_v47  ;;  %v3008_v17 = vld [vmem:[%s3797_s0 + $0xd0] sm:$0xff]  ;;  %v1056_v18 = vld [vmem:[%s3799_s2 + $0xd8] sm:$0xff]  ;;  %v69_v23 = vld [vmem:[%s3798_s1 + $0x80] sm:$0xff] }
  0x29   :  { %2303 = vmatprep.subr.mxu0 %v289_v50  ;;  %2423 = vmatprep.subr.mxu1 %v1059_v51  ;;  %v68_v19 = vld [vmem:[%s3798_s1 + $0x78] sm:$0xff]  ;;  %v1055_v22 = vld [vmem:[%s3799_s2 + $0xd0] sm:$0xff]  ;;  %v1054_v27 = vld [vmem:[%s3799_s2 + $0xc8] sm:$0xff] }
  0x2a   :  { %158 = vperm.xlu1 %2621, %v2911_v48   ;;  %155 = vperm.xlu0 %2620, %v2916_v49   ;;  %v3030_v24 = vld [vmem:[%s3797_s0 + $0xd8] sm:$0xff]  ;;  %v70_v28 = vld [vmem:[%s3798_s1 + $0x88] sm:$0xff]  ;;  %v1053_v29 = vld [vmem:[%s3799_s2 + $0xc0] sm:$0xff] }
  0x2b   :  { %2304 = vmatpush3.msra.mxu0 %v289_v50  ;;  %2383 = vmatmul.mubr.msk.f32.gmra.mxu1 %vm527_vm1, %v60_v52  ;;  %v71_v32 = vld [vmem:[%s3798_s1 + $0x90] sm:$0xff]  ;;  %v3051_v33 = vld [vmem:[%s3797_s0 + $0xe0] sm:$0xff]  ;;  %v1052_v34 = vld [vmem:[%s3799_s2 + $0xb8] sm:$0xff] }
  0x2c   :  { %2305 = vmatprep.subr.mxu0 %v288_v53  ;;  %2385 = vmatprep.mubr.msk.f32.mxu1 %vm527_vm1, %v61_v54  ;;  %v72_v35 = vld [vmem:[%s3798_s1 + $0x98] sm:$0xff]  ;;  %v1051_v38 = vld [vmem:[%s3799_s2 + $0xb0] sm:$0xff]  ;;  %v73_v39 = vld [vmem:[%s3798_s1 + $0xa0] sm:$0xff] }
  0x2d   :  { %2306 = vmatpush3.msra.mxu0 %v288_v53  ;;  %2424 = vmatpush3.msra.mxu1 %v1059_v51  ;;  %v3072_v40 = vld [vmem:[%s3797_s0 + $0xe8] sm:$0xff]  ;;  %v1049_v45 = vld [vmem:[%s3799_s2 + $0xa0] sm:$0xff]  ;;  %v75_v46 = vld [vmem:[%s3798_s1 + $0xb0] sm:$0xff] }
  0x2e   :  { %164 = vperm.xlu1 %2621, %v2940_v55   ;;  %161 = vperm.xlu0 %2620, %v2945_v56   ;;  %v1050_v41 = vld [vmem:[%s3799_s2 + $0xa8] sm:$0xff]  ;;  %v3093_v47 = vld [vmem:[%s3797_s0 + $0xf0] sm:$0xff]  ;;  %v1048_v50 = vld [vmem:[%s3799_s2 + $0x98] sm:$0xff] }
  0x2f   :  { %2307 = vmatprep.subr.mxu0 %v287_v57  ;;  %2386 = vmatmul.mubr.msk.f32.gmra.mxu1 %vm527_vm1, %v62_v58  ;;  %v74_v42 = vld [vmem:[%s3798_s1 + $0xa8] sm:$0xff]  ;;  %v76_v51 = vld [vmem:[%s3798_s1 + $0xb8] sm:$0xff]  ;;  %v1047_v52 = vld [vmem:[%s3799_s2 + $0x90] sm:$0xff] }
  0x30   :  { %2308 = vmatpush3.msra.mxu0 %v287_v57  ;;  %2388 = vmatprep.mubr.msk.f32.mxu1 %vm527_vm1, %v63_v59  ;;  %v77_v53 = vld [vmem:[%s3798_s1 + $0xc0] sm:$0xff]  ;;  %v3114_v54 = vld [vmem:[%s3797_s0 + $0xf8] sm:$0xff]  ;;  %v1046_v57 = vld [vmem:[%s3799_s2 + $0x88] sm:$0xff] }
  0x31   :  { %2309 = vmatprep.subr.mxu0 %v286_v61  ;;  %2425 = vmatprep.subr.mxu1 %v1058_v8  ;;  %v78_v58 = vld [vmem:[%s3798_s1 + $0xc8] sm:$0xff]  ;;  %v1045_v59 = vld [vmem:[%s3799_s2 + $0x80] sm:$0xff] }
  0x32   :  { %2622 = vset.pattern.permute.xlu1 %v2666_v63  ;;  %167 = vperm.xlu0 %2620, %v2963_v60  }
  0x33   :  { %854 = vperm.xlu1 %2622, %v2710_v1   ;;  %2310 = vmatpush3.msra.mxu0 %v286_v61  ;;  %v79_v61 = vld [vmem:[%s3798_s1 + $0xd0] sm:$0xff] }
  0x34   :  { %2389 = vmatmul.mubr.msk.f32.gmra.mxu1 %vm527_vm1, %v64_v62  ;;  %2501 = vmatprep.subr.mxu0 %v2998_v13  ;;  %v80_v62 = vld [vmem:[%s3798_s1 + $0xd8] sm:$0xff] }
  0x35   :  { %2391 = vmatprep.mubr.msk.f32.mxu1 %vm527_vm1, %v65_v2  ;;  %2426 = vmatpush3.msra.mxu1 %v1058_v8  ;;  %v2667_v2 = vmov 2   ;;  %v81_v8 = vld [vmem:[%s3798_s1 + $0xe0] sm:$0xff] }
  0x36   :  { %170 = vperm.xlu0 %2620, %v2985_v10   ;;  %2427 = vmatprep.subr.mxu1 %v1057_v11 }
  0x37   :  { %857 = vperm.xlu1 %2622, %v2722_v4   ;;  %2428 = vmatpush3.msra.mxu1 %v1057_v11  ;;  %v82_v11 = vld [vmem:[%s3798_s1 + $0xe8] sm:$0xff] }
  0x38   :  { %2392 = vmatmul.mubr.msk.f32.gmra.mxu1 %vm527_vm1, %v66_v12  ;;  %2429 = vmatprep.subr.mxu1 %v1056_v18  ;;  %v83_v12 = vld [vmem:[%s3798_s1 + $0xf0] sm:$0xff] }
  0x39   :  { %2394 = vmatprep.mubr.msk.f32.mxu1 %vm527_vm1, %v67_v14  ;;  %2430 = vmatpush3.msra.mxu1 %v1056_v18 }
  0x3a   :  { %173 = vperm.xlu0 %2620, %v3008_v17   ;;  %2431 = vmatprep.subr.mxu1 %v1055_v22 }
  0x3b   :  { %860 = vperm.xlu1 %2622, %v2705_v0   ;;  %2432 = vmatpush3.msra.mxu1 %v1055_v22 }
  0x3c   :  { %2395 = vmatmul.mubr.msk.f32.gmra.mxu1 %vm527_vm1, %v68_v19  ;;  %2433 = vmatprep.subr.mxu1 %v1054_v27  ;;  %v3209_v19 = vld [vmem:[%s3799_s2 + $0x168] sm:$0xff] }
  0x3d   :  { %2397 = vmatprep.mubr.msk.f32.mxu1 %vm527_vm1, %v69_v23  ;;  %2434 = vmatpush3.msra.mxu1 %v1054_v27  ;;  %v3229_v23 = vld [vmem:[%s3799_s2 + $0x158] sm:$0xff] }
  0x3e   :  { %176 = vperm.xlu0 %2620, %v3030_v24   ;;  %2435 = vmatprep.subr.mxu1 %v1053_v29 }
  0x3f   :  { %863 = vperm.xlu1 %2622, %v2717_v3   ;;  %2436 = vmatpush3.msra.mxu1 %v1053_v29 }
  0x40   :  { %2398 = vmatmul.mubr.msk.f32.gmra.mxu1 %vm527_vm1, %v70_v28  ;;  %2437 = vmatprep.subr.mxu1 %v1052_v34  ;;  %v3251_v28 = vld [vmem:[%s3799_s2 + $0x148] sm:$0xff] }
  0x41   :  { %2400 = vmatprep.mubr.msk.f32.mxu1 %vm527_vm1, %v71_v32  ;;  %2438 = vmatpush3.msra.mxu1 %v1052_v34  ;;  %v3263_v34 = vld [vmem:[%s3799_s2 + $0x140] sm:$0xff] }
  0x42   :  { %179 = vperm.xlu0 %2620, %v3051_v33   ;;  %2439 = vmatprep.subr.mxu1 %v1051_v38 }
  0x43   :  { %866 = vperm.xlu1 %2622, %v2734_v6   ;;  %2440 = vmatpush3.msra.mxu1 %v1051_v38 }
  0x44   :  { %2401 = vmatmul.mubr.msk.f32.gmra.mxu1 %vm527_vm1, %v72_v35  ;;  %2441 = vmatprep.subr.mxu1 %v1050_v41 }
  0x45   :  { %2403 = vmatprep.mubr.msk.f32.mxu1 %vm527_vm1, %v73_v39  ;;  %2442 = vmatpush3.msra.mxu1 %v1050_v41  ;;  %v3286_v39 = vld [vmem:[%s3799_s2 + $0x130] sm:$0xff] }
  0x46   :  { %182 = vperm.xlu0 %2620, %v3072_v40   ;;  %2443 = vmatprep.subr.mxu1 %v1049_v45 }
  0x47   :  { %869 = vperm.xlu1 %2622, %v2729_v5   ;;  %2444 = vmatpush3.msra.mxu1 %v1049_v45 }
  0x48   :  { %2404 = vmatmul.mubr.msk.f32.gmra.mxu1 %vm527_vm1, %v74_v42  ;;  %2445 = vmatprep.subr.mxu1 %v1048_v50 }
  0x49   :  { %2406 = vmatprep.mubr.msk.f32.mxu1 %vm527_vm1, %v75_v46  ;;  %2446 = vmatpush3.msra.mxu1 %v1048_v50 }
  0x4a   :  { %185 = vperm.xlu0 %2620, %v3093_v47   ;;  %2447 = vmatprep.subr.mxu1 %v1047_v52 }
  0x4b   :  { %872 = vperm.xlu1 %2622, %v2749_v9   ;;  %2448 = vmatpush3.msra.mxu1 %v1047_v52  ;;  %v3332_v52 = vld [vmem:[%s3799_s2 + $0x110] sm:$0xff] }
  0x4c   :  { %2407 = vmatmul.mubr.msk.f32.gmra.mxu1 %vm527_vm1, %v76_v51  ;;  %2449 = vmatprep.subr.mxu1 %v1046_v57  ;;  %v3323_v51 = vld [vmem:[%s3799_s2 + $0x118] sm:$0xff] }
  0x4d   :  { %2409 = vmatprep.mubr.msk.f32.mxu1 %vm527_vm1, %v77_v53  ;;  %2450 = vmatpush3.msra.mxu1 %v1046_v57 }
  0x4e   :  { %188 = vperm.xlu0 %2620, %v3114_v54   ;;  %2451 = vmatprep.subr.mxu1 %v1045_v59 }
  0x4f   :  { %875 = vperm.xlu1 %2622, %v2741_v7   ;;  %2452 = vmatpush3.msra.mxu1 %v1045_v59 }
  0x50   :  { %2410 = vmatmul.mubr.msk.f32.gmra.mxu1 %vm527_vm1, %v78_v58  ;;  %2581 = vmatprep.subr.mxu1 %v2998_v13  ;;  %v3342_v58 = vld [vmem:[%s3799_s2 + $0x108] sm:$0xff] }
  0x51   :  { %2412 = vmatprep.mubr.msk.f32.mxu1 %vm527_vm1, %v79_v61 }
  0x52   :  { %2625 = vset.pattern.permute.xlu0 %v2667_v2 }
  0x53   :  { %2623 = vset.pattern.permute.xlu1 %v2667_v2  ;;  %1322 = vperm.xlu0 %2625, %v2722_v4  }
  0x54   :  { %1319 = vperm.xlu1 %2623, %v2710_v1   ;;  %2413 = vmatmul.mubr.msk.f32.gmra.mxu1 %vm527_vm1, %v80_v62  ;;  %v84_v1 = vld [vmem:[%s3798_s1 + $0xf8] sm:$0xff] }
  0x55   :  { %2415 = vmatprep.mubr.msk.f32.mxu1 %vm527_vm1, %v81_v8 }
  0x57   :  { %1331 = vperm.xlu0 %2625, %v2734_v6  }
  0x58   :  { %2624 = vset.pattern.permute.xlu1 %v2666_v63  ;;  %2416 = vmatmul.mubr.msk.f32.gmra.mxu1 %vm527_vm1, %v82_v11 }
  0x59   :  { %881 = vperm.xlu1 %2624, %v2771_v15   ;;  %2418 = vmatprep.mubr.msk.f32.mxu1 %vm527_vm1, %v83_v12 }
  0x5b   :  { %1340 = vperm.xlu0 %2625, %v2741_v7  }
  0x5c   :  { %2419 = vmatmul.mubr.msk.f32.gmra.mxu1 %vm527_vm1, %v84_v1 }
  0x5d   :  { %884 = vperm.xlu1 %2624, %v2797_v21  }
  0x5f   :  { %1349 = vperm.xlu0 %2625, %v2797_v21   ;;  %v3198_v21 = vld [vmem:[%s3799_s2 + $0x170] sm:$0xff] }
  0x61   :  { %2626 = vset.pattern.permute.xlu1 %v2667_v2 }
  0x62   :  { %1325 = vperm.xlu1 %2626, %v2705_v0   ;;  %v92_v0 = vlaneseq }
  0x63   :  { %2632 = vset.pattern.permute.xlu0 %v2666_v63 }
  0x64   :  { %878 = vperm.xlu0 %2632, %v2776_v16  }
  0x66   :  { %1328 = vperm.xlu1 %2626, %v2717_v3   ;;  %v3182_v3 = vand.u32 127, %v92_v0 }
  0x68   :  { %887 = vperm.xlu0 %2632, %v2792_v20  }
  0x6a   :  { %2627 = vset.pattern.permute.xlu1 %v2666_v63 }
  0x6b   :  { %890 = vperm.xlu1 %2627, %v2818_v26  }
  0x6c   :  { %896 = vperm.xlu0 %2632, %v2839_v31  }
  0x6f   :  { %893 = vperm.xlu1 %2627, %v2813_v25  }
  0x70   :  { %905 = vperm.xlu0 %2632, %v2858_v36  }
  0x73   :  { %2628 = vset.pattern.permute.xlu1 %v2667_v2 }
  0x74   :  { %1334 = vperm.xlu1 %2628, %v2729_v5   ;;  %914 = vperm.xlu0 %2632, %v2916_v49   ;;  %v2668_v5 = vmov 1.0  }
  0x78   :  { %1337 = vperm.xlu1 %2628, %v2749_v9   ;;  %923 = vperm.xlu0 %2632, %v2940_v55  }
  0x7c   :  { %2629 = vset.pattern.permute.xlu1 %v2666_v63  ;;  %932 = vperm.xlu0 %2632, %v3008_v17  }
  0x7d   :  { %v102_v4 = vpop.permute.xlu1 %101  ;;  %899 = vperm.xlu1 %2629, %v2834_v30   ;;  %v96_v6 = vpop.permute.xlu0 %95 }
  0x7e   :  { %vm190_vm2 = vcmp.eq.s32.totalorder %v96_v6, %v3182_v3  ;;  %vm192_vm4 = vcmp.eq.s32.totalorder %v102_v4, %v3182_v3 }
  0x7f   :  { %2311 = vmatprep.mubr.msk.f32.mxu0 %vm190_vm2, %v2668_v5 }
  0x80   :  { %941 = vperm.xlu0 %2632, %v3072_v40  }
  0x81   :  { %v105_v7 = vpop.permute.xlu1 %104  ;;  %902 = vperm.xlu1 %2629, %v2863_v37   ;;  %v99_v9 = vpop.permute.xlu0 %98 }
  0x82   :  { %vm191_vm3 = vcmp.eq.s32.totalorder %v99_v9, %v3182_v3  ;;  %vm193_vm5 = vcmp.eq.s32.totalorder %v105_v7, %v3182_v3 }
  0x83   :  { %2312 = vmatmul.mubr.msk.f32.vlgmr.msra.gmra.mxu0 %vm191_vm3, %v2668_v5 }
  0x84   :  { %2314 = vmatprep.mubr.msk.f32.mxu0 %vm192_vm4, %v2668_v5  ;;  %2640 = vset.pattern.permute.xlu0 %v2667_v2 }
  0x85   :  { %v111_v14 = vpop.permute.xlu1 %110  ;;  %2630 = vset.pattern.permute.xlu1 %v2667_v2  ;;  %v108_v18 = vpop.permute.xlu0 %107  ;;  %1358 = vperm.xlu0 %2640, %v2813_v25  }
  0x86   :  { %1343 = vperm.xlu1 %2630, %v2776_v16   ;;  %vm194_vm6 = vcmp.eq.s32.totalorder %v108_v18, %v3182_v3  ;;  %2502 = vmatpush3.msra.mxu0 %v2998_v13  ;;  %v3218_v16 = vld [vmem:[%s3799_s2 + $0x160] sm:$0xff]  ;;  %vm195_vm7 = vcmp.eq.s32.totalorder %v111_v14, %v3182_v3 }
  0x87   :  { %2315 = vmatmul.mubr.msk.f32.gmra.mxu0 %vm193_vm5, %v2668_v5  ;;  %2503 = vmatprep.subr.mxu0 %v3198_v21 }
  0x88   :  { %2317 = vmatprep.mubr.msk.f32.mxu0 %vm194_vm6, %v2668_v5  ;;  %2504 = vmatpush3.msra.mxu0 %v3198_v21 }
  0x89   :  { %v117_v25 = vpop.permute.xlu1 %116  ;;  %v114_v22 = vpop.permute.xlu0 %113  ;;  %2505 = vmatprep.subr.mxu0 %v3209_v19  ;;  %1367 = vperm.xlu0 %2640, %v2863_v37  }
  0x8a   :  { %1346 = vperm.xlu1 %2630, %v2771_v15   ;;  %vm196_vm8 = vcmp.eq.s32.totalorder %v114_v22, %v3182_v3  ;;  %2506 = vmatpush3.msra.mxu0 %v3209_v19  ;;  %v3239_v15 = vld [vmem:[%s3799_s2 + $0x150] sm:$0xff]  ;;  %vm197_vm9 = vcmp.eq.s32.totalorder %v117_v25, %v3182_v3 }
  0x8b   :  { %2318 = vmatmul.mubr.msk.f32.gmra.mxu0 %vm195_vm7, %v2668_v5  ;;  %2507 = vmatprep.subr.mxu0 %v3218_v16 }
  0x8c   :  { %2320 = vmatprep.mubr.msk.f32.mxu0 %vm196_vm8, %v2668_v5  ;;  %2508 = vmatpush3.msra.mxu0 %v3218_v16 }
  0x8d   :  { %v123_v37 = vpop.permute.xlu1 %122  ;;  %v120_v27 = vpop.permute.xlu0 %119  ;;  %2509 = vmatprep.subr.mxu0 %v3229_v23  ;;  %1376 = vperm.xlu0 %2640, %v2888_v43  }
  0x8e   :  { %2631 = vset.pattern.permute.xlu1 %v2666_v63  ;;  %vm198_vm10 = vcmp.eq.s32.totalorder %v120_v27, %v3182_v3  ;;  %2510 = vmatpush3.msra.mxu0 %v3229_v23  ;;  %vm199_vm11 = vcmp.eq.s32.totalorder %v123_v37, %v3182_v3 }
  0x8f   :  { %908 = vperm.xlu1 %2631, %v2893_v44   ;;  %2321 = vmatmul.mubr.msk.f32.gmra.mxu0 %vm197_vm9, %v2668_v5 }
  0x90   :  { %2323 = vmatprep.mubr.msk.f32.mxu0 %vm198_vm10, %v2668_v5  ;;  %2511 = vmatprep.subr.mxu0 %v3239_v15 }
  0x91   :  { %v129_v29 = vpop.permute.xlu1 %128  ;;  %v126_v32 = vpop.permute.xlu0 %125  ;;  %2512 = vmatpush3.msra.mxu0 %v3239_v15  ;;  %1385 = vperm.xlu0 %2640, %v2945_v56  }
  0x92   :  { %vm200_vm12 = vcmp.eq.s32.totalorder %v126_v32, %v3182_v3  ;;  %2513 = vmatprep.subr.mxu0 %v3251_v28  ;;  %vm201_vm13 = vcmp.eq.s32.totalorder %v129_v29, %v3182_v3 }
  0x93   :  { %911 = vperm.xlu1 %2631, %v2888_v43   ;;  %2324 = vmatmul.mubr.msk.f32.gmra.mxu0 %vm199_vm11, %v2668_v5  ;;  %v3277_v43 = vld [vmem:[%s3799_s2 + $0x138] sm:$0xff] }
  0x94   :  { %2326 = vmatprep.mubr.msk.f32.mxu0 %vm200_vm12, %v2668_v5  ;;  %2514 = vmatpush3.msra.mxu0 %v3251_v28 }
  0x95   :  { %v135_v35 = vpop.permute.xlu1 %134  ;;  %v132_v38 = vpop.permute.xlu0 %131  ;;  %2515 = vmatprep.subr.mxu0 %v3263_v34  ;;  %1391 = vperm.xlu0 %2640, %v2963_v60  }
  0x96   :  { %vm202_vm14 = vcmp.eq.s32.totalorder %v132_v38, %v3182_v3  ;;  %2516 = vmatpush3.msra.mxu0 %v3263_v34  ;;  %vm203_vm15 = vcmp.eq.s32.totalorder %v135_v35, %v3182_v3 }
  0x97   :  { %2633 = vset.pattern.permute.xlu1 %v2667_v2  ;;  %2327 = vmatmul.mubr.msk.f32.gmra.mxu0 %vm201_vm13, %v2668_v5 }
  0x98   :  { %1352 = vperm.xlu1 %2633, %v2792_v20   ;;  %2329 = vmatprep.mubr.msk.f32.mxu0 %vm202_vm14, %v2668_v5  ;;  %v3298_v20 = vld [vmem:[%s3799_s2 + $0x128] sm:$0xff] }
  0x99   :  { %v141_v41 = vpop.permute.xlu1 %140  ;;  %v138_v42 = vpop.permute.xlu0 %137  ;;  %2517 = vmatprep.subr.mxu0 %v3277_v43  ;;  %1394 = vperm.xlu0 %2640, %v2985_v10  }
  0x9a   :  { %vm204_vm0 = vcmp.eq.s32.totalorder %v138_v42, %v3182_v3  ;;  %2518 = vmatpush3.msra.mxu0 %v3277_v43  ;;  %vm205_vm1 = vcmp.eq.s32.totalorder %v141_v41, %v3182_v3 }
  0x9b   :  { %2330 = vmatmul.mubr.msk.f32.gmra.mxu0 %vm203_vm15, %v2668_v5  ;;  %2519 = vmatprep.subr.mxu0 %v3286_v39 }
  0x9c   :  { %1355 = vperm.xlu1 %2633, %v2818_v26   ;;  %2332 = vmatprep.mubr.msk.f32.mxu0 %vm204_vm0, %v2668_v5  ;;  %v3311_v26 = vld [vmem:[%s3799_s2 + $0x120] sm:$0xff] }
  0x9d   :  { %v147_v45 = vpop.permute.xlu1 %146  ;;  %v144_v46 = vpop.permute.xlu0 %143  ;;  %2520 = vmatpush3.msra.mxu0 %v3286_v39  ;;  %1397 = vperm.xlu0 %2640, %v3008_v17  }
  0x9e   :  { %vm206_vm2 = vcmp.eq.s32.totalorder %v144_v46, %v3182_v3  ;;  %2521 = vmatprep.subr.mxu0 %v3298_v20  ;;  %vm207_vm3 = vcmp.eq.s32.totalorder %v147_v45, %v3182_v3 }
  0x9f   :  { %2333 = vmatmul.mubr.msk.f32.gmra.mxu0 %vm205_vm1, %v2668_v5 }
  0xa0   :  { %2634 = vset.pattern.permute.xlu1 %v2666_v63  ;;  %2335 = vmatprep.mubr.msk.f32.mxu0 %vm206_vm2, %v2668_v5 }
  0xa1   :  { %v153_v50 = vpop.permute.xlu1 %152  ;;  %917 = vperm.xlu1 %2634, %v2911_v48   ;;  %v150_v17 = vpop.permute.xlu0 %149  ;;  %2522 = vmatpush3.msra.mxu0 %v3298_v20 }
  0xa2   :  { %vm208_vm4 = vcmp.eq.s32.totalorder %v150_v17, %v3182_v3  ;;  %2523 = vmatprep.subr.mxu0 %v3311_v26  ;;  %1400 = vperm.xlu0 %2640, %v3030_v24   ;;  %vm209_vm5 = vcmp.eq.s32.totalorder %v153_v50, %v3182_v3 }
  0xa3   :  { %2336 = vmatmul.mubr.msk.f32.gmra.mxu0 %vm207_vm3, %v2668_v5 }
  0xa4   :  { %2338 = vmatprep.mubr.msk.f32.mxu0 %vm208_vm4, %v2668_v5  ;;  %2524 = vmatpush3.msra.mxu0 %v3311_v26 }
  0xa5   :  { %v159_v53 = vpop.permute.xlu1 %158  ;;  %920 = vperm.xlu1 %2634, %v2945_v56   ;;  %v156_v57 = vpop.permute.xlu0 %155  ;;  %2525 = vmatprep.subr.mxu0 %v3323_v51  ;;  %v3351_v56 = vld [vmem:[%s3799_s2 + $0x100] sm:$0xff] }
  0xa6   :  { %vm210_vm6 = vcmp.eq.s32.totalorder %v156_v57, %v3182_v3  ;;  %2526 = vmatpush3.msra.mxu0 %v3323_v51  ;;  %vm211_vm7 = vcmp.eq.s32.totalorder %v159_v53, %v3182_v3 }
  0xa7   :  { %2339 = vmatmul.mubr.msk.f32.gmra.mxu0 %vm209_vm5, %v2668_v5  ;;  %2527 = vmatprep.subr.mxu0 %v3332_v52 }
  0xa8   :  { %2341 = vmatprep.mubr.msk.f32.mxu0 %vm210_vm6, %v2668_v5  ;;  %2528 = vmatpush3.msra.mxu0 %v3332_v52 }
  0xa9   :  { %v165_v59 = vpop.permute.xlu1 %164  ;;  %2635 = vset.pattern.permute.xlu1 %v2667_v2  ;;  %v162_v61 = vpop.permute.xlu0 %161  ;;  %2529 = vmatprep.subr.mxu0 %v3342_v58 }
  0xaa   :  { %1361 = vperm.xlu1 %2635, %v2839_v31   ;;  %vm212_vm8 = vcmp.eq.s32.totalorder %v162_v61, %v3182_v3  ;;  %2530 = vmatpush3.msra.mxu0 %v3342_v58  ;;  %vm213_vm9 = vcmp.eq.s32.totalorder %v165_v59, %v3182_v3 }
  0xab   :  { %2342 = vmatmul.mubr.msk.f32.gmra.mxu0 %vm211_vm7, %v2668_v5  ;;  %2531 = vmatprep.subr.mxu0 %v3351_v56 }
  0xac   :  { %2344 = vmatprep.mubr.msk.f32.mxu0 %vm212_vm8, %v2668_v5  ;;  %2532 = vmatpush3.msra.mxu0 %v3351_v56 }
  0xad   :  { %v168_v62 = vpop.permute.xlu0 %167 }
  0xae   :  { %1364 = vperm.xlu1 %2635, %v2834_v30   ;;  %v855_v8 = vpop.permute.xlu1 %854  ;;  %vm214_vm10 = vcmp.eq.s32.totalorder %v168_v62, %v3182_v3 }
  0xaf   :  { %vm949_vm11 = vcmp.eq.s32.totalorder %v855_v8, %v3182_v3  ;;  %2345 = vmatmul.mubr.msk.f32.gmra.mxu0 %vm213_vm9, %v2668_v5 }
  0xb0   :  { %2453 = vmatprep.mubr.msk.f32.mxu1 %vm949_vm11, %v2668_v5  ;;  %2347 = vmatprep.mubr.msk.f32.mxu0 %vm214_vm10, %v2668_v5 }
  0xb1   :  { %v171_v31 = vpop.permute.xlu0 %170 }
  0xb2   :  { %2636 = vset.pattern.permute.xlu1 %v2666_v63  ;;  %v858_v11 = vpop.permute.xlu1 %857  ;;  %vm215_vm12 = vcmp.eq.s32.totalorder %v171_v31, %v3182_v3 }
  0xb3   :  { %vm950_vm13 = vcmp.eq.s32.totalorder %v858_v11, %v3182_v3  ;;  %926 = vperm.xlu1 %2636, %v2963_v60   ;;  %2348 = vmatmul.mubr.msk.f32.gmra.mxu0 %vm215_vm12, %v2668_v5 }
  0xb4   :  { %2454 = vmatmul.mubr.msk.f32.vlgmr.msra.gmra.mxu1 %vm950_vm13, %v2668_v5 }
  0xb5   :  { %v174_v30 = vpop.permute.xlu0 %173  ;;  %2597 = vmatpush3.msra.mxu1 %v2998_v13 }
  0xb6   :  { %v861_v12 = vpop.permute.xlu1 %860  ;;  %vm216_vm14 = vcmp.eq.s32.totalorder %v174_v30, %v3182_v3  ;;  %2582 = vmatprep.subr.mxu1 %v3198_v21 }
  0xb7   :  { %vm951_vm15 = vcmp.eq.s32.totalorder %v861_v12, %v3182_v3  ;;  %929 = vperm.xlu1 %2636, %v2985_v10   ;;  %2350 = vmatprep.mubr.msk.f32.mxu0 %vm216_vm14, %v2668_v5 }
  0xb8   :  { %2456 = vmatprep.mubr.msk.f32.mxu1 %vm951_vm15, %v2668_v5  ;;  %2598 = vmatpush3.msra.mxu1 %v3198_v21 }
  0xb9   :  { %v177_v60 = vpop.permute.xlu0 %176  ;;  %2583 = vmatprep.subr.mxu1 %v3209_v19 }
  0xba   :  { %v864_v1 = vpop.permute.xlu1 %863  ;;  %vm217_vm0 = vcmp.eq.s32.totalorder %v177_v60, %v3182_v3  ;;  %2599 = vmatpush3.msra.mxu1 %v3209_v19 }
  0xbb   :  { %vm952_vm1 = vcmp.eq.s32.totalorder %v864_v1, %v3182_v3  ;;  %2637 = vset.pattern.permute.xlu1 %v2667_v2  ;;  %2351 = vmatmul.mubr.msk.f32.gmra.mxu0 %vm217_vm0, %v2668_v5 }
  0xbc   :  { %1370 = vperm.xlu1 %2637, %v2858_v36   ;;  %2457 = vmatmul.mubr.msk.f32.gmra.mxu1 %vm952_vm1, %v2668_v5 }
  0xbd   :  { %v180_v10 = vpop.permute.xlu0 %179  ;;  %2584 = vmatprep.subr.mxu1 %v3218_v16 }
  0xbe   :  { %v867_v13 = vpop.permute.xlu1 %866  ;;  %vm218_vm2 = vcmp.eq.s32.totalorder %v180_v10, %v3182_v3  ;;  %2600 = vmatpush3.msra.mxu1 %v3218_v16 }
  0xbf   :  { %vm953_vm3 = vcmp.eq.s32.totalorder %v867_v13, %v3182_v3  ;;  %2353 = vmatprep.mubr.msk.f32.mxu0 %vm218_vm2, %v2668_v5  ;;  %2585 = vmatprep.subr.mxu1 %v3229_v23 }
  0xc0   :  { %1373 = vperm.xlu1 %2637, %v2893_v44   ;;  %2459 = vmatprep.mubr.msk.f32.mxu1 %vm953_vm3, %v2668_v5 }
  0xc1   :  { %v183_v36 = vpop.permute.xlu0 %182  ;;  %2601 = vmatpush3.msra.mxu1 %v3229_v23 }
  0xc2   :  { %v870_v0 = vpop.permute.xlu1 %869  ;;  %vm219_vm4 = vcmp.eq.s32.totalorder %v183_v36, %v3182_v3  ;;  %2586 = vmatprep.subr.mxu1 %v3239_v15 }
  0xc3   :  { %vm954_vm5 = vcmp.eq.s32.totalorder %v870_v0, %v3182_v3  ;;  %2354 = vmatmul.mubr.msk.f32.gmra.mxu0 %vm219_vm4, %v2668_v5  ;;  %2602 = vmatpush3.msra.mxu1 %v3239_v15 }
  0xc4   :  { %2638 = vset.pattern.permute.xlu1 %v2666_v63  ;;  %2460 = vmatmul.mubr.msk.f32.gmra.mxu1 %vm954_vm5, %v2668_v5 }
  0xc5   :  { %935 = vperm.xlu1 %2638, %v3030_v24   ;;  %v186_v44 = vpop.permute.xlu0 %185  ;;  %2587 = vmatprep.subr.mxu1 %v3251_v28 }
  0xc6   :  { %v873_v4 = vpop.permute.xlu1 %872  ;;  %vm220_vm6 = vcmp.eq.s32.totalorder %v186_v44, %v3182_v3  ;;  %2603 = vmatpush3.msra.mxu1 %v3251_v28 }
  0xc7   :  { %vm955_vm7 = vcmp.eq.s32.totalorder %v873_v4, %v3182_v3  ;;  %2356 = vmatprep.mubr.msk.f32.mxu0 %vm220_vm6, %v2668_v5  ;;  %2588 = vmatprep.subr.mxu1 %v3263_v34 }
  0xc8   :  { %2462 = vmatprep.mubr.msk.f32.mxu1 %vm955_vm7, %v2668_v5  ;;  %2604 = vmatpush3.msra.mxu1 %v3263_v34 }
  0xc9   :  { %938 = vperm.xlu1 %2638, %v3051_v33   ;;  %v189_v24 = vpop.permute.xlu0 %188  ;;  %2589 = vmatprep.subr.mxu1 %v3277_v43 }
  0xca   :  { %v876_v6 = vpop.permute.xlu1 %875  ;;  %vm221_vm8 = vcmp.eq.s32.totalorder %v189_v24, %v3182_v3  ;;  %2605 = vmatpush3.msra.mxu1 %v3277_v43 }
  0xcb   :  { %vm956_vm9 = vcmp.eq.s32.totalorder %v876_v6, %v3182_v3  ;;  %2357 = vmatmul.mubr.msk.f32.gmra.mxu0 %vm221_vm8, %v2668_v5  ;;  %2590 = vmatprep.subr.mxu1 %v3286_v39 }
  0xcc   :  { %2463 = vmatmul.mubr.msk.f32.gmra.mxu1 %vm956_vm9, %v2668_v5 }
  0xcd   :  { %2639 = vset.pattern.permute.xlu1 %v2667_v2  ;;  %2606 = vmatpush3.msra.mxu1 %v3286_v39 }
  0xce   :  { %1379 = vperm.xlu1 %2639, %v2916_v49   ;;  %v1323_v7 = vpop.permute.xlu0 %1322  ;;  %2591 = vmatprep.subr.mxu1 %v3298_v20 }
  0xcf   :  { %v1320_v9 = vpop.permute.xlu1 %1319  ;;  %vm1415_vm10 = vcmp.eq.s32.totalorder %v1323_v7, %v3182_v3  ;;  %2607 = vmatpush3.msra.mxu1 %v3298_v20 }
  0xd0   :  { %vm1414_vm11 = vcmp.eq.s32.totalorder %v1320_v9, %v3182_v3  ;;  %2592 = vmatprep.subr.mxu1 %v3311_v26 }
  0xd1   :  { %2533 = vmatprep.mubr.msk.f32.mxu0 %vm1414_vm11, %v2668_v5  ;;  %2608 = vmatpush3.msra.mxu1 %v3311_v26 }
  0xd2   :  { %1382 = vperm.xlu1 %2639, %v2911_v48   ;;  %2534 = vmatmul.mubr.msk.f32.vlgmr.msra.gmra.mxu0 %vm1415_vm10, %v2668_v5  ;;  %v1332_v49 = vpop.permute.xlu0 %1331 }
  0xd3   :  { %2593 = vmatprep.subr.mxu1 %v3323_v51  ;;  %vm1418_vm14 = vcmp.eq.s32.totalorder %v1332_v49, %v3182_v3 }
  0xd4   :  { %v882_v21 = vpop.permute.xlu1 %881  ;;  %2609 = vmatpush3.msra.mxu1 %v3323_v51 }
  0xd5   :  { %2594 = vmatprep.subr.mxu1 %v3332_v52  ;;  %vm958_vm15 = vcmp.eq.s32.totalorder %v882_v21, %v3182_v3 }
  0xd6   :  { %2641 = vset.pattern.permute.xlu1 %v2666_v63  ;;  %v1341_v14 = vpop.permute.xlu0 %1340  ;;  %2610 = vmatpush3.msra.mxu1 %v3332_v52 }
  0xd7   :  { %944 = vperm.xlu1 %2641, %v3093_v47   ;;  %2595 = vmatprep.subr.mxu1 %v3342_v58  ;;  %vm1421_vm7 = vcmp.eq.s32.totalorder %v1341_v14, %v3182_v3 }
  0xd8   :  { %v885_v48 = vpop.permute.xlu1 %884  ;;  %2611 = vmatpush3.msra.mxu1 %v3342_v58 }
  0xd9   :  { %2596 = vmatprep.subr.mxu1 %v3351_v56  ;;  %vm959_vm0 = vcmp.eq.s32.totalorder %v885_v48, %v3182_v3 }
  0xda   :  { %v3446_v18 = vpop.permute.xlu0 %1349  ;;  %2612 = vmatpush3.msra.mxu1 %v3351_v56 }
  0xdb   :  { %947 = vperm.xlu1 %2641, %v3114_v54  }
  0xdd   :  { %v1326_v19 = vpop.permute.xlu1 %1325 }
  0xde   :  { %vm1416_vm12 = vcmp.eq.s32.totalorder %v1326_v19, %v3182_v3 }
  0xdf   :  { %2642 = vset.pattern.permute.xlu1 %v2667_v2  ;;  %2536 = vmatprep.mubr.msk.f32.mxu0 %vm1416_vm12, %v2668_v5  ;;  %v879_v63 = vpop.permute.xlu0 %878  ;;  %v3497_v34 = vpop.f32.mrf.mxu1 }
  0xe0   :  { %vm957_vm13 = vcmp.eq.s32.totalorder %v879_v63, %v3182_v3  ;;  %1388 = vperm.xlu1 %2642, %v2940_v55  }
  0xe1   :  { %v1329_v16 = vpop.permute.xlu1 %1328  ;;  %2465 = vmatprep.mubr.msk.f32.mxu1 %vm957_vm13, %v2668_v5  ;;  %vm1424_vm13 = vcmp.eq.s32.totalorder %v3446_v18, %v3182_v3  ;;  %v3504_v43 = vpop.f32.mrf.mxu1 }
  0xe2   :  { %vm1417_vm1 = vcmp.eq.s32.totalorder %v1329_v16, %v3182_v3  ;;  %2466 = vmatmul.mubr.msk.f32.gmra.mxu1 %vm958_vm15, %v2668_v5 }
  0xe3   :  { %2468 = vmatprep.mubr.msk.f32.mxu1 %vm959_vm0, %v2668_v5  ;;  %2537 = vmatmul.mubr.msk.f32.gmra.mxu0 %vm1417_vm1, %v2668_v5  ;;  %v888_v2 = vpop.permute.xlu0 %887  ;;  %v3508_v42 = vpop.f32.mrf.mxu1 }
  0xe4   :  { %1403 = vperm.xlu1 %2642, %v3051_v33   ;;  %vm960_vm2 = vcmp.eq.s32.totalorder %v888_v2, %v3182_v3  ;;  %2539 = vmatprep.mubr.msk.f32.mxu0 %vm1418_vm14, %v2668_v5 }
  0xe5   :  { %v3513_v45 = vpop.f32.mrf.mxu1 }
  0xe6   :  { %v891_v55 = vpop.permute.xlu1 %890  ;;  %2469 = vmatmul.mubr.msk.f32.gmra.mxu1 %vm960_vm2, %v2668_v5 }
  0xe7   :  { %vm961_vm3 = vcmp.eq.s32.totalorder %v891_v55, %v3182_v3  ;;  %v897_v25 = vpop.permute.xlu0 %896  ;;  %v3517_v26 = vpop.f32.mrf.mxu1 }
  0xe8   :  { %1406 = vperm.xlu1 %2642, %v3072_v40   ;;  %2471 = vmatprep.mubr.msk.f32.mxu1 %vm961_vm3, %v2668_v5  ;;  %vm963_vm4 = vcmp.eq.s32.totalorder %v897_v25, %v3182_v3 }
  0xe9   :  { %v3522_v17 = vpop.f32.mrf.mxu1 }
  0xea   :  { %v894_v22 = vpop.permute.xlu1 %893 }
  0xeb   :  { %vm962_vm5 = vcmp.eq.s32.totalorder %v894_v22, %v3182_v3  ;;  %v906_v23 = vpop.permute.xlu0 %905  ;;  %v3527_v51 = vpop.f32.mrf.mxu1 }
  0xec   :  { %1409 = vperm.xlu1 %2642, %v3093_v47   ;;  %2472 = vmatmul.mubr.msk.f32.gmra.mxu1 %vm962_vm5, %v2668_v5  ;;  %vm966_vm10 = vcmp.eq.s32.totalorder %v906_v23, %v3182_v3 }
  0xed   :  { %2474 = vmatprep.mubr.msk.f32.mxu1 %vm963_vm4, %v2668_v5  ;;  %v3531_v57 = vpop.f32.mrf.mxu1 }
  0xef   :  { %v1335_v33 = vpop.permute.xlu1 %1334  ;;  %v3537_v56 = vpop.f32.mrf.mxu1 }
  0xf0   :  { %vm1419_vm6 = vcmp.eq.s32.totalorder %v1335_v33, %v3182_v3  ;;  %1412 = vperm.xlu1 %2642, %v3114_v54   ;;  %v915_v54 = vpop.permute.xlu0 %914 }
  0xf1   :  { %2540 = vmatmul.mubr.msk.f32.gmra.mxu0 %vm1419_vm6, %v2668_v5  ;;  %vm969_vm0 = vcmp.eq.s32.totalorder %v915_v54, %v3182_v3  ;;  %v3541_v61 = vpop.f32.mrf.mxu1 }
  0xf3   :  { %v1338_v40 = vpop.permute.xlu1 %1337 }
  0xf4   :  { %vm1420_vm8 = vcmp.eq.s32.totalorder %v1338_v40, %v3182_v3  ;;  %v924_v15 = vpop.permute.xlu0 %923  ;;  %v3546_v8 = vpop.f32.mrf.mxu1 }
  0xf5   :  { %2542 = vmatprep.mubr.msk.f32.mxu0 %vm1420_vm8, %v2668_v5  ;;  %vm972_vm6 = vcmp.eq.s32.totalorder %v924_v15, %v3182_v3 }
  0xf6   :  { %2543 = vmatmul.mubr.msk.f32.gmra.mxu0 %vm1421_vm7, %v2668_v5  ;;  %v3550_v30 = vpop.f32.mrf.mxu1 }
  0xf8   :  { %v900_v47 = vpop.permute.xlu1 %899  ;;  %v933_v29 = vpop.permute.xlu0 %932 }
  0xf9   :  { %vm964_vm9 = vcmp.eq.s32.totalorder %v900_v47, %v3182_v3  ;;  %v3555_v60 = vpop.f32.mrf.mxu1 }
  0xfa   :  { %2475 = vmatmul.mubr.msk.f32.gmra.mxu1 %vm964_vm9, %v2668_v5 }
  0xfb   :  { %v3559_v10 = vpop.f32.mrf.mxu1 }
  0xfc   :  { %v903_v37 = vpop.permute.xlu1 %902  ;;  %v3500_v38 = vpop.permute.xlu0 %941 }
  0xfd   :  { %vm965_vm11 = vcmp.eq.s32.totalorder %v903_v37, %v3182_v3  ;;  %v3565_v0 = vpop.f32.mrf.mxu1 }
  0xfe   :  { %2477 = vmatprep.mubr.msk.f32.mxu1 %vm965_vm11, %v2668_v5 }
  0xff   :  { %2478 = vmatmul.mubr.msk.f32.gmra.mxu1 %vm966_vm10, %v2668_v5  ;;  %v3576_v6 = vpop.f32.mrf.mxu1 }
 0x100   :  { %v1359_v41 = vpop.permute.xlu0 %1358 }
 0x101   :  { %v1344_v27 = vpop.permute.xlu1 %1343  ;;  %vm1427_vm3 = vcmp.eq.s32.totalorder %v1359_v41, %v3182_v3  ;;  %v3584_v21 = vpop.f32.mrf.mxu1 }
 0x102   :  { %vm1422_vm12 = vcmp.eq.s32.totalorder %v1344_v27, %v3182_v3 }
 0x103   :  { %2545 = vmatprep.mubr.msk.f32.mxu0 %vm1422_vm12, %v2668_v5  ;;  %v3594_v63 = vpop.f32.mrf.mxu1 }
 0x104   :  { %v1368_v53 = vpop.permute.xlu0 %1367 }
 0x105   :  { %v1347_v28 = vpop.permute.xlu1 %1346  ;;  %vm1430_vm9 = vcmp.eq.s32.totalorder %v1368_v53, %v3182_v3  ;;  %v3602_v22 = vpop.f32.mrf.mxu1 }
 0x106   :  { %vm1423_vm14 = vcmp.eq.s32.totalorder %v1347_v28, %v3182_v3 }
 0x107   :  { %2546 = vmatmul.mubr.msk.f32.gmra.mxu0 %vm1423_vm14, %v2668_v5  ;;  %v3610_v23 = vpop.f32.mrf.mxu1 }
 0x108   :  { %2548 = vmatprep.mubr.msk.f32.mxu0 %vm1424_vm13, %v2668_v5  ;;  %vm975_vm13 = vcmp.eq.s32.totalorder %v933_v29, %v3182_v3  ;;  %v1377_v11 = vpop.permute.xlu0 %1376 }
 0x109   :  { %v3617_v28 = vpop.f32.mrf.mxu1 }
 0x10a   :  { %v909_v32 = vpop.permute.xlu1 %908 }
 0x10b   :  { %vm967_vm15 = vcmp.eq.s32.totalorder %v909_v32, %v3182_v3 }
 0x10c   :  { %2480 = vmatprep.mubr.msk.f32.mxu1 %vm967_vm15, %v2668_v5  ;;  %vm1433_vm15 = vcmp.eq.s32.totalorder %v1377_v11, %v3182_v3  ;;  %v1386_v24 = vpop.permute.xlu0 %1385 }
 0x10e   :  { %v912_v35 = vpop.permute.xlu1 %911 }
 0x10f   :  { %vm968_vm1 = vcmp.eq.s32.totalorder %v912_v35, %v3182_v3 }
 0x110   :  { %2481 = vmatmul.mubr.msk.f32.gmra.mxu1 %vm968_vm1, %v2668_v5  ;;  %v1392_v18 = vpop.permute.xlu0 %1391 }
 0x111   :  { %2483 = vmatprep.mubr.msk.f32.mxu1 %vm969_vm0, %v2668_v5 }
 0x113   :  { %v1353_v39 = vpop.permute.xlu1 %1352 }
 0x114   :  { %vm1425_vm2 = vcmp.eq.s32.totalorder %v1353_v39, %v3182_v3  ;;  %v1395_v25 = vpop.permute.xlu0 %1394 }
 0x115   :  { %2549 = vmatmul.mubr.msk.f32.gmra.mxu0 %vm1425_vm2, %v2668_v5 }
 0x117   :  { %v1356_v20 = vpop.permute.xlu1 %1355 }
 0x118   :  { %vm1426_vm4 = vcmp.eq.s32.totalorder %v1356_v20, %v3182_v3  ;;  %v1398_v54 = vpop.permute.xlu0 %1397 }
 0x119   :  { %2551 = vmatprep.mubr.msk.f32.mxu0 %vm1426_vm4, %v2668_v5 }
 0x11a   :  { %2552 = vmatmul.mubr.msk.f32.gmra.mxu0 %vm1427_vm3, %v2668_v5  ;;  %vm978_vm3 = vcmp.eq.s32.totalorder %v3500_v38, %v3182_v3  ;;  %v3627_v38 = vpop.f32.mrf.mxu1 }
 0x11c   :  { %v918_v46 = vpop.permute.xlu1 %917 }
 0x11d   :  { %vm970_vm5 = vcmp.eq.s32.totalorder %v918_v46, %v3182_v3  ;;  %v1401_v39 = vpop.permute.xlu0 %1400 }
 0x11e   :  { %2484 = vmatmul.mubr.msk.f32.gmra.mxu1 %vm970_vm5, %v2668_v5  ;;  %vm1436_vm5 = vcmp.eq.s32.totalorder %v1386_v24, %v3182_v3 }
 0x120   :  { %v921_v50 = vpop.permute.xlu1 %920 }
 0x121   :  { %vm971_vm7 = vcmp.eq.s32.totalorder %v921_v50, %v3182_v3  ;;  %v3639_v50 = vpop.f32.mrf.mxu1 }
 0x122   :  { %2486 = vmatprep.mubr.msk.f32.mxu1 %vm971_vm7, %v2668_v5 }
 0x123   :  { %2487 = vmatmul.mubr.msk.f32.gmra.mxu1 %vm972_vm6, %v2668_v5 }
 0x125   :  { %v1362_v52 = vpop.permute.xlu1 %1361 }
 0x126   :  { %vm1428_vm8 = vcmp.eq.s32.totalorder %v1362_v52, %v3182_v3 }
 0x127   :  { %2554 = vmatprep.mubr.msk.f32.mxu0 %vm1428_vm8, %v2668_v5 }
 0x129   :  { %v1365_v58 = vpop.permute.xlu1 %1364 }
 0x12a   :  { %vm1429_vm10 = vcmp.eq.s32.totalorder %v1365_v58, %v3182_v3 }
 0x12b   :  { %2555 = vmatmul.mubr.msk.f32.gmra.mxu0 %vm1429_vm10, %v2668_v5  ;;  %vm1438_vm10 = vcmp.eq.s32.totalorder %v1392_v18, %v3182_v3 }
 0x12c   :  { %2557 = vmatprep.mubr.msk.f32.mxu0 %vm1430_vm9, %v2668_v5 }
 0x12e   :  { %v927_v59 = vpop.permute.xlu1 %926 }
 0x12f   :  { %vm973_vm11 = vcmp.eq.s32.totalorder %v927_v59, %v3182_v3  ;;  %v3648_v59 = vpop.f32.mrf.mxu1 }
 0x130   :  { %2489 = vmatprep.mubr.msk.f32.mxu1 %vm973_vm11, %v2668_v5  ;;  %vm1439_vm11 = vcmp.eq.s32.totalorder %v1395_v25, %v3182_v3 }
 0x132   :  { %v930_v62 = vpop.permute.xlu1 %929 }
 0x133   :  { %vm974_vm12 = vcmp.eq.s32.totalorder %v930_v62, %v3182_v3 }
 0x134   :  { %2490 = vmatmul.mubr.msk.f32.gmra.mxu1 %vm974_vm12, %v2668_v5 }
 0x135   :  { %2492 = vmatprep.mubr.msk.f32.mxu1 %vm975_vm13, %v2668_v5  ;;  %vm1440_vm13 = vcmp.eq.s32.totalorder %v1398_v54, %v3182_v3 }
 0x137   :  { %v1371_v31 = vpop.permute.xlu1 %1370 }
 0x138   :  { %vm1431_vm14 = vcmp.eq.s32.totalorder %v1371_v31, %v3182_v3 }
 0x139   :  { %2558 = vmatmul.mubr.msk.f32.gmra.mxu0 %vm1431_vm14, %v2668_v5  ;;  %vm1441_vm14 = vcmp.eq.s32.totalorder %v1401_v39, %v3182_v3 }
 0x13b   :  { %v1374_v12 = vpop.permute.xlu1 %1373 }
 0x13c   :  { %vm1432_vm0 = vcmp.eq.s32.totalorder %v1374_v12, %v3182_v3  ;;  %v3656_v12 = vpop.f32.mrf.mxu1 }
 0x13d   :  { %2560 = vmatprep.mubr.msk.f32.mxu0 %vm1432_vm0, %v2668_v5 }
 0x13e   :  { %2561 = vmatmul.mubr.msk.f32.gmra.mxu0 %vm1433_vm15, %v2668_v5  ;;  %v3664_v24 = vpop.f32.mrf.mxu1 }
 0x13f   :  { %3803 = vst [vmem:[#allocation5_spill] sm:$0xff] %v3664_v24 }
 0x140   :  { %v936_v1 = vpop.permute.xlu1 %935  ;;  %v3670_v18 = vpop.f32.mrf.mxu1 }
 0x141   :  { %vm976_vm1 = vcmp.eq.s32.totalorder %v936_v1, %v3182_v3  ;;  %3804 = vst [vmem:[#allocation6_spill] sm:$0xff] %v3670_v18 }
 0x142   :  { %2493 = vmatmul.mubr.msk.f32.gmra.mxu1 %vm976_vm1, %v2668_v5  ;;  %v3674_v25 = vpop.f32.mrf.mxu1 }
 0x143   :  { %v3563_v13 = vpop.f32.mrf.mxu0  ;;  %3806 = vst [vmem:[#allocation8_spill] sm:$0xff] %v3674_v25 }
 0x144   :  { %v939_v36 = vpop.permute.xlu1 %938  ;;  %v700_v25 = vadd.f32 %v3497_v34, %v3563_v13 }
 0x145   :  { %vm977_vm2 = vcmp.eq.s32.totalorder %v939_v36, %v3182_v3  ;;  %v3568_v44 = vpop.f32.mrf.mxu0 }
 0x146   :  { %2495 = vmatprep.mubr.msk.f32.mxu1 %vm977_vm2, %v2668_v5 }
 0x147   :  { %v3573_v4 = vpop.f32.mrf.mxu0  ;;  %2496 = vmatmul.mubr.msk.f32.gmra.mxu1 %vm978_vm3, %v2668_v5 }
 0x149   :  { %v1380_v7 = vpop.permute.xlu1 %1379  ;;  %v3578_v9 = vpop.f32.mrf.mxu0 }
 0x14a   :  { %vm1434_vm4 = vcmp.eq.s32.totalorder %v1380_v7, %v3182_v3 }
 0x14b   :  { %v3581_v49 = vpop.f32.mrf.mxu0  ;;  %2563 = vmatprep.mubr.msk.f32.mxu0 %vm1434_vm4, %v2668_v5 }
 0x14d   :  { %v1383_v14 = vpop.permute.xlu1 %1382  ;;  %v3587_v48 = vpop.f32.mrf.mxu0 }
 0x14e   :  { %vm1435_vm6 = vcmp.eq.s32.totalorder %v1383_v14, %v3182_v3 }
 0x14f   :  { %v3590_v19 = vpop.f32.mrf.mxu0  ;;  %2564 = vmatmul.mubr.msk.f32.gmra.mxu0 %vm1435_vm6, %v2668_v5 }
 0x150   :  { %2566 = vmatprep.mubr.msk.f32.mxu0 %vm1436_vm5, %v2668_v5 }
 0x151   :  { %v3596_v16 = vpop.f32.mrf.mxu0 }
 0x152   :  { %v945_v2 = vpop.permute.xlu1 %944 }
 0x153   :  { %vm979_vm7 = vcmp.eq.s32.totalorder %v945_v2, %v3182_v3  ;;  %v3599_v55 = vpop.f32.mrf.mxu0 }
 0x154   :  { %2498 = vmatprep.mubr.msk.f32.mxu1 %vm979_vm7, %v2668_v5 }
 0x155   :  { %v3604_v33 = vpop.f32.mrf.mxu0 }
 0x156   :  { %v948_v40 = vpop.permute.xlu1 %947 }
 0x157   :  { %vm980_vm8 = vcmp.eq.s32.totalorder %v948_v40, %v3182_v3  ;;  %v3607_v47 = vpop.f32.mrf.mxu0 }
 0x158   :  { %2499 = vmatmul.mubr.msk.f32.gmra.mxu1 %vm980_vm8, %v2668_v5 }
 0x159   :  { %v3612_v37 = vpop.f32.mrf.mxu0 }
 0x15b   :  { %v1389_v27 = vpop.permute.xlu1 %1388  ;;  %v3614_v15 = vpop.f32.mrf.mxu0 }
 0x15c   :  { %vm1437_vm9 = vcmp.eq.s32.totalorder %v1389_v27, %v3182_v3 }
 0x15d   :  { %v3620_v29 = vpop.f32.mrf.mxu0  ;;  %2567 = vmatmul.mubr.msk.f32.gmra.mxu0 %vm1437_vm9, %v2668_v5 }
 0x15e   :  { %2569 = vmatprep.mubr.msk.f32.mxu0 %vm1438_vm10, %v2668_v5 }
 0x15f   :  { %v1404_v32 = vpop.permute.xlu1 %1403  ;;  %v3624_v35 = vpop.f32.mrf.mxu0 }
 0x160   :  { %vm1442_vm12 = vcmp.eq.s32.totalorder %v1404_v32, %v3182_v3 }
 0x161   :  { %v3631_v41 = vpop.f32.mrf.mxu0  ;;  %2570 = vmatmul.mubr.msk.f32.gmra.mxu0 %vm1439_vm11, %v2668_v5  ;;  %2575 = vmatprep.mubr.msk.f32.mxu1 %vm1442_vm12, %v2668_v5 }
 0x162   :  { %2572 = vmatprep.mubr.msk.f32.mxu0 %vm1440_vm13, %v2668_v5 }
 0x163   :  { %v1407_v20 = vpop.permute.xlu1 %1406  ;;  %v3636_v46 = vpop.f32.mrf.mxu0 }
 0x164   :  { %vm1443_vm15 = vcmp.eq.s32.totalorder %v1407_v20, %v3182_v3 }
 0x165   :  { %v3642_v52 = vpop.f32.mrf.mxu0  ;;  %2573 = vmatmul.mubr.msk.f32.gmra.mxu0 %vm1441_vm14, %v2668_v5  ;;  %2576 = vmatmul.mubr.msk.f32.vlgmr.msra.gmra.mxu1 %vm1443_vm15, %v2668_v5 }
 0x167   :  { %v1410_v53 = vpop.permute.xlu1 %1409  ;;  %v3646_v58 = vpop.f32.mrf.mxu0 }
 0x168   :  { %vm1444_vm0 = vcmp.eq.s32.totalorder %v1410_v53, %v3182_v3 }
 0x169   :  { %v3651_v62 = vpop.f32.mrf.mxu0  ;;  %2578 = vmatprep.mubr.msk.f32.mxu1 %vm1444_vm0, %v2668_v5 }
 0x16b   :  { %v1413_v31 = vpop.permute.xlu1 %1412  ;;  %v3654_v11 = vpop.f32.mrf.mxu0 }
 0x16c   :  { %vm1445_vm1 = vcmp.eq.s32.totalorder %v1413_v31, %v3182_v3  ;;  %v3678_v3 = vpop.f32.mrf.mxu1 }
 0x16d   :  { %v3659_v1 = vpop.f32.mrf.mxu0  ;;  %2579 = vmatmul.mubr.msk.f32.gmra.mxu1 %vm1445_vm1, %v2668_v5  ;;  %3808 = vst [vmem:[#allocation10_spill] sm:$0xff] %v3678_v3 }
 0x16e   :  { %v3682_v5 = vpop.f32.mrf.mxu1 }
 0x16f   :  { %v3662_v36 = vpop.f32.mrf.mxu0  ;;  %3810 = vst [vmem:[#allocation12_spill] sm:$0xff] %v3682_v5 }
 0x170   :  { %v3686_v32 = vpop.f32.mrf.mxu1 }
 0x171   :  { %v3666_v7 = vpop.f32.mrf.mxu0  ;;  %3812 = vst [vmem:[#allocation14_spill] sm:$0xff] %v3686_v32  ;;  %v3701_v32 = vld [vmem:[%s3801_s4] ss:$0 sm:$0xff]  ;;  %s2669_s4 = smov [#allocation2]  }
 0x172   :  { %v844_v20 = vpop.f32.mrf.mxu1  ;;  %s1859_s21 = sshll.u32 %s2669_s4, 4  ;;  %s1860_s21 = int_to_ptr.vmem [resolvable:$true] %s1859_s21 }
 0x173   :  { %v3668_v14 = vpop.f32.mrf.mxu0  ;;  %s2643_s22 = scalar_lea.vmem %s1860_s21, 4096  ;;  %p2648_p1 = scmp.lt.s32.totalorder %s1860_s21, %s1860_s21 }
 0x174   :  { %v2455_v31 = vpop.f32.mrf.mxu1  ;;  %p2644_p0 = scmp.ne.s32.totalorder %s1860_s21, %s2643_s22  ;;  %p2649_p2 = scmp.lt.s32.totalorder %s2643_s22, %s2643_s22 }
 0x175   :  { %v3672_v2 = vpop.f32.mrf.mxu0  ;;  %v1287_v3 = vadd.f32 %v2455_v31, %v700_v25  ;;  %v705_v25 = vadd.f32 %v3513_v45, %v3578_v9  ;;  %v715_v45 = vadd.f32 %v3522_v17, %v3587_v48 }
 0x176   :  { %3805 = vst [vmem:[#allocation7_spill] sm:$0xff] %v3672_v2  ;;  %v1127_v5 = vpop.f32.mrf.mxu1  ;;  %p2650_p3 = por %p2649_p2, %p2648_p1 }
 0x178   :  { %p2651_p4 = pnand %p2650_p3, %p2644_p0 }
 0x17b   :  { %v3676_v40 = vpop.f32.mrf.mxu0 }
 0x17c   :  { %3807 = vst [vmem:[#allocation9_spill] sm:$0xff] %v3676_v40 }
 0x17d   :  { %v3680_v54 = vpop.f32.mrf.mxu0 }
 0x17e   :  { %3809 = vst [vmem:[#allocation11_spill] sm:$0xff] %v3680_v54  ;;  %v695_v54 = vadd.f32 %v3504_v43, %v3568_v44  ;;  %v710_v43 = vadd.f32 %v3508_v42, %v3573_v4  ;;  %v720_v42 = vadd.f32 %v3517_v26, %v3581_v49  ;;  %v725_v26 = vadd.f32 %v3531_v57, %v3596_v16 }
 0x17f   :  { %v740_v57 = vadd.f32 %v3537_v56, %v3599_v55  ;;  %v750_v56 = vadd.f32 %v3546_v8, %v3607_v47  ;;  %v755_v8 = vadd.f32 %v3559_v10, %v3620_v29  ;;  %v770_v10 = vadd.f32 %v3565_v0, %v3624_v35 }
 0x180   :  { %v780_v0 = vadd.f32 %v3584_v21, %v3636_v46 }
 0x183   :  { %v3684_v27 = vpop.f32.mrf.mxu0 }
 0x184   :  { %3811 = vst [vmem:[#allocation13_spill] sm:$0xff] %v3684_v27 }
 0x185   :  { %v3688_v39 = vpop.f32.mrf.mxu0 }
 0x186   :  { %3813 = vst [vmem:[#allocation15_spill] sm:$0xff] %v3688_v39  ;;  %v1286_v39 = vadd.f32 %v1127_v5, %v695_v54 }
 0x18b   :  { %v3690_v53 = vpop.f32.mrf.mxu0 }
 0x18c   :  { %3814 = vst [vmem:[#allocation16_spill] sm:$0xff] %v3690_v53 }
 0x18d   :  { %v518_v18 = vpop.f32.mrf.mxu0 }
 0x18e   :  { %v3694_v40 = vadd.f32 %v844_v20, %v518_v18  ;;  %v2458_v18 = vpop.f32.mrf.mxu1 }
 0x18f   :  { %v1289_v20 = vadd.f32 %v2458_v18, %v710_v43  ;;  %v730_v43 = vadd.f32 %v3527_v51, %v3590_v19 }
 0x190   :  { %v1137_v44 = vpop.f32.mrf.mxu1 }
 0x191   :  { %v1288_v54 = vadd.f32 %v1137_v44, %v705_v25 }
 0x192   :  { %v2535_v27 = vpop.f32.mrf.mxu0 }
 0x193   :  { %v1752_v53 = vadd.f32 %v2535_v27, %v1287_v3 }
 0x194   :  { %v1592_v24 = vpop.f32.mrf.mxu0 }
 0x195   :  { %v1791_v2 = vadd.f32 %v3701_v32, %v1752_v53  ;;  %v1751_v34 = vadd.f32 %v1592_v24, %v1286_v39  ;;  %v2461_v39 = vpop.f32.mrf.mxu1 }
 0x196   :  { %v1291_v9 = vadd.f32 %v2461_v39, %v720_v42 }
 0x197   :  { %1823 = vst [vmem:[#allocation2 + $0x8] sm:$0xff] %v1791_v2  ;;  %v1790_v13 = vadd.f32 %v3701_v32, %v1751_v34  ;;  %v1147_v4 = vpop.f32.mrf.mxu1 }
 0x199   :  { %1822 = vst [vmem:[#allocation2] sm:$0xff] %v1790_v13  ;;  %v2464_v53 = vpop.f32.mrf.mxu1  ;;  %v1290_v13 = vadd.f32 %v1147_v4, %v715_v45 }
 0x19a   :  { %v1293_v49 = vadd.f32 %v2464_v53, %v730_v43 }
 0x19b   :  { %v1157_v25 = vpop.f32.mrf.mxu1 }
 0x1a3   :  { %v2538_v31 = vpop.f32.mrf.mxu0 }
 0x1a4   :  { %v1754_v3 = vadd.f32 %v2538_v31, %v1289_v20 }
 0x1a5   :  { %v1602_v5 = vpop.f32.mrf.mxu0 }
 0x1a6   :  { %v1793_v27 = vadd.f32 %v3701_v32, %v1754_v3  ;;  %v1753_v24 = vadd.f32 %v1602_v5, %v1288_v54  ;;  %v1292_v54 = vadd.f32 %v1157_v25, %v725_v26 }
 0x1a8   :  { %1825 = vst [vmem:[#allocation2 + $0x18] sm:$0xff] %v1793_v27  ;;  %v1792_v2 = vadd.f32 %v3701_v32, %v1753_v24  ;;  %v2467_v24 = vpop.f32.mrf.mxu1 }
 0x1a9   :  { %v1295_v39 = vadd.f32 %v2467_v24, %v740_v57 }
 0x1aa   :  { %1824 = vst [vmem:[#allocation2 + $0x10] sm:$0xff] %v1792_v2  ;;  %v1167_v16 = vpop.f32.mrf.mxu1  ;;  %v735_v2 = vadd.f32 %v3541_v61, %v3604_v33  ;;  %v745_v61 = vadd.f32 %v3550_v30, %v3612_v37 }
 0x1ac   :  { %v1294_v4 = vadd.f32 %v1167_v16, %v735_v2 }
 0x1b1   :  { %v2541_v34 = vpop.f32.mrf.mxu0 }
 0x1b2   :  { %v1756_v18 = vadd.f32 %v2541_v34, %v1291_v9 }
 0x1b3   :  { %v1612_v44 = vpop.f32.mrf.mxu0 }
 0x1b4   :  { %v1795_v20 = vadd.f32 %v3701_v32, %v1756_v18  ;;  %v1755_v31 = vadd.f32 %v1612_v44, %v1290_v13  ;;  %v2470_v18 = vpop.f32.mrf.mxu1 }
 0x1b5   :  { %v1297_v33 = vadd.f32 %v2470_v18, %v750_v56  ;;  %v790_v56 = vadd.f32 %v3602_v22, %v3646_v58 }
 0x1b6   :  { %1827 = vst [vmem:[#allocation2 + $0x28] sm:$0xff] %v1795_v20  ;;  %v1794_v17 = vadd.f32 %v3701_v32, %v1755_v31  ;;  %v2544_v48 = vpop.f32.mrf.mxu0  ;;  %v1177_v55 = vpop.f32.mrf.mxu1  ;;  %v760_v31 = vadd.f32 %v3555_v60, %v3614_v15 }
 0x1b7   :  { %v1758_v3 = vadd.f32 %v2544_v48, %v1293_v49  ;;  %v1296_v25 = vadd.f32 %v1177_v55, %v745_v61 }
 0x1b8   :  { %1826 = vst [vmem:[#allocation2 + $0x20] sm:$0xff] %v1794_v17  ;;  %v1622_v5 = vpop.f32.mrf.mxu0  ;;  %v2473_v43 = vpop.f32.mrf.mxu1 }
 0x1b9   :  { %v1797_v27 = vadd.f32 %v3701_v32, %v1758_v3  ;;  %v1757_v51 = vadd.f32 %v1622_v5, %v1292_v54  ;;  %v1299_v47 = vadd.f32 %v2473_v43, %v760_v31 }
 0x1ba   :  { %v1187_v49 = vpop.f32.mrf.mxu1 }
 0x1bb   :  { %1829 = vst [vmem:[#allocation2 + $0x38] sm:$0xff] %v1797_v27  ;;  %v1796_v19 = vadd.f32 %v3701_v32, %v1757_v51  ;;  %v1298_v54 = vadd.f32 %v1187_v49, %v755_v8  ;;  %v795_v8 = vadd.f32 %v3627_v38, %v3659_v1  ;;  %v805_v38 = vadd.f32 %v3648_v59, %v3666_v7 }
 0x1bc   :  { %v2476_v51 = vpop.f32.mrf.mxu1 }
 0x1bd   :  { %1828 = vst [vmem:[#allocation2 + $0x30] sm:$0xff] %v1796_v19  ;;  %v765_v19 = vadd.f32 %v3576_v6, %v3631_v41  ;;  %v1301_v24 = vadd.f32 %v2476_v51, %v770_v10  ;;  %v775_v6 = vadd.f32 %v3594_v63, %v3642_v52 }
 0x1be   :  { %v1197_v29 = vpop.f32.mrf.mxu1 }
 0x1bf   :  { %v1300_v16 = vadd.f32 %v1197_v29, %v765_v19 }
 0x1c7   :  { %v2547_v42 = vpop.f32.mrf.mxu0 }
 0x1c8   :  { %v1760_v45 = vadd.f32 %v2547_v42, %v1295_v39 }
 0x1c9   :  { %v1632_v9 = vpop.f32.mrf.mxu0 }
 0x1ca   :  { %v1799_v53 = vadd.f32 %v3701_v32, %v1760_v45  ;;  %v1759_v34 = vadd.f32 %v1632_v9, %v1294_v4  ;;  %v2479_v9 = vpop.f32.mrf.mxu1 }
 0x1cb   :  { %v1303_v41 = vadd.f32 %v2479_v9, %v780_v0  ;;  %v3818_v0 = vld [vmem:[#allocation6_spill] sm:$0xff] }
 0x1cc   :  { %1831 = vst [vmem:[#allocation2 + $0x48] sm:$0xff] %v1799_v53  ;;  %v1798_v13 = vadd.f32 %v3701_v32, %v1759_v34  ;;  %v1207_v53 = vpop.f32.mrf.mxu1 }
 0x1ce   :  { %1830 = vst [vmem:[#allocation2 + $0x40] sm:$0xff] %v1798_v13  ;;  %v1302_v13 = vadd.f32 %v1207_v53, %v775_v6  ;;  %v3820_v6 = vld [vmem:[#allocation10_spill] sm:$0xff] }
 0x1d0   :  { %v2482_v35 = vpop.f32.mrf.mxu1 }
 0x1d1   :  { %v1305_v21 = vadd.f32 %v2482_v35, %v790_v56  ;;  %v3819_v35 = vld [vmem:[#allocation13_spill] sm:$0xff] }
 0x1d2   :  { %v1217_v55 = vpop.f32.mrf.mxu1 }
 0x1d5   :  { %v2550_v44 = vpop.f32.mrf.mxu0 }
 0x1d6   :  { %v1762_v20 = vadd.f32 %v2550_v44, %v1297_v33  ;;  %v785_v44 = vadd.f32 %v3610_v23, %v3651_v62 }
 0x1d7   :  { %v1642_v26 = vpop.f32.mrf.mxu0 }
 0x1d8   :  { %v1801_v17 = vadd.f32 %v3701_v32, %v1762_v20  ;;  %v1761_v48 = vadd.f32 %v1642_v26, %v1296_v25  ;;  %v1304_v25 = vadd.f32 %v1217_v55, %v785_v44  ;;  %v3823_v55 = vld [vmem:[#allocation15_spill] sm:$0xff] }
 0x1da   :  { %1833 = vst [vmem:[#allocation2 + $0x58] sm:$0xff] %v1801_v17  ;;  %v1800_v30 = vadd.f32 %v3701_v32, %v1761_v48  ;;  %v2553_v37 = vpop.f32.mrf.mxu0  ;;  %v800_v48 = vadd.f32 %v3617_v28, %v3654_v11  ;;  %v810_v28 = vadd.f32 %v3639_v50, %v3662_v36  ;;  %v3817_v36 = vld [vmem:[#allocation9_spill] sm:$0xff] }
 0x1db   :  { %v1764_v3 = vadd.f32 %v2553_v37, %v1299_v47  ;;  %v830_v59 = vadd.f32 %v3818_v0, %v3817_v36 }
 0x1dc   :  { %1832 = vst [vmem:[#allocation2 + $0x50] sm:$0xff] %v1800_v30  ;;  %v1652_v5 = vpop.f32.mrf.mxu0 }
 0x1dd   :  { %v1803_v27 = vadd.f32 %v3701_v32, %v1764_v3  ;;  %v1763_v60 = vadd.f32 %v1652_v5, %v1298_v54 }
 0x1de   :  { %v2485_v46 = vpop.f32.mrf.mxu1 }
 0x1df   :  { %1835 = vst [vmem:[#allocation2 + $0x68] sm:$0xff] %v1803_v27  ;;  %v1802_v15 = vadd.f32 %v3701_v32, %v1763_v60  ;;  %v1307_v47 = vadd.f32 %v2485_v46, %v800_v48 }
 0x1e0   :  { %v1227_v26 = vpop.f32.mrf.mxu1 }
 0x1e1   :  { %1834 = vst [vmem:[#allocation2 + $0x60] sm:$0xff] %v1802_v15  ;;  %v1306_v54 = vadd.f32 %v1227_v26, %v795_v8 }
 0x1e3   :  { %v2488_v17 = vpop.f32.mrf.mxu1 }
 0x1e4   :  { %v1309_v11 = vadd.f32 %v2488_v17, %v810_v28 }
 0x1e5   :  { %v1237_v23 = vpop.f32.mrf.mxu1 }
 0x1eb   :  { %v2556_v57 = vpop.f32.mrf.mxu0 }
 0x1ec   :  { %v1766_v2 = vadd.f32 %v2556_v57, %v1301_v24  ;;  %v820_v24 = vadd.f32 %v3656_v12, %v3668_v14  ;;  %v1308_v57 = vadd.f32 %v1237_v23, %v805_v38 }
 0x1ed   :  { %v1662_v39 = vpop.f32.mrf.mxu0 }
 0x1ee   :  { %v1805_v42 = vadd.f32 %v3701_v32, %v1766_v2  ;;  %v1765_v4 = vadd.f32 %v1662_v39, %v1300_v16 }
 0x1f0   :  { %1837 = vst [vmem:[#allocation2 + $0x78] sm:$0xff] %v1805_v42  ;;  %v1804_v45 = vadd.f32 %v3701_v32, %v1765_v4  ;;  %v3815_v42 = vld [vmem:[#allocation7_spill] sm:$0xff]  ;;  %v3816_v4 = vld [vmem:[#allocation5_spill] sm:$0xff] }
 0x1f2   :  { %1836 = vst [vmem:[#allocation2 + $0x70] sm:$0xff] %v1804_v45  ;;  %v815_v45 = vadd.f32 %v3816_v4, %v3815_v42 }
 0x1f4   :  { %v2491_v62 = vpop.f32.mrf.mxu1 }
 0x1f5   :  { %v1311_v9 = vadd.f32 %v2491_v62, %v820_v24 }
 0x1f6   :  { %v1247_v30 = vpop.f32.mrf.mxu1 }
 0x1f9   :  { %v2559_v34 = vpop.f32.mrf.mxu0 }
 0x1fa   :  { %v1768_v18 = vadd.f32 %v2559_v34, %v1303_v41  ;;  %v840_v41 = vadd.f32 %v3820_v6, %v3819_v35  ;;  %v1310_v34 = vadd.f32 %v1247_v30, %v815_v45  ;;  %v3825_v30 = vld [vmem:[#allocation16_spill] sm:$0xff] }
 0x1fb   :  { %v1672_v61 = vpop.f32.mrf.mxu0 }
 0x1fc   :  { %v1807_v33 = vadd.f32 %v3701_v32, %v1768_v18  ;;  %v1767_v43 = vadd.f32 %v1672_v61, %v1302_v13  ;;  %v3821_v13 = vld [vmem:[#allocation11_spill] sm:$0xff]  ;;  %v3822_v18 = vld [vmem:[#allocation8_spill] sm:$0xff] }
 0x1fd   :  { %v825_v56 = vadd.f32 %v3822_v18, %v3821_v13  ;;  %v3824_v61 = vld [vmem:[#allocation12_spill] sm:$0xff] }
 0x1fe   :  { %1839 = vst [vmem:[#allocation2 + $0x88] sm:$0xff] %v1807_v33  ;;  %v1806_v63 = vadd.f32 %v3701_v32, %v1767_v43  ;;  %v2562_v52 = vpop.f32.mrf.mxu0  ;;  %v835_v33 = vadd.f32 %v3824_v61, %v3823_v55 }
 0x1ff   :  { %v1770_v20 = vadd.f32 %v2562_v52, %v1305_v21 }
 0x200   :  { %1838 = vst [vmem:[#allocation2 + $0x80] sm:$0xff] %v1806_v63  ;;  %v1682_v31 = vpop.f32.mrf.mxu0 }
 0x201   :  { %v1809_v22 = vadd.f32 %v3701_v32, %v1770_v20  ;;  %v1769_v58 = vadd.f32 %v1682_v31, %v1304_v25 }
 0x202   :  { %v2494_v5 = vpop.f32.mrf.mxu1 }
 0x203   :  { %1841 = vst [vmem:[#allocation2 + $0x98] sm:$0xff] %v1809_v22  ;;  %v1808_v49 = vadd.f32 %v3701_v32, %v1769_v58  ;;  %v1313_v21 = vadd.f32 %v2494_v5, %v830_v59 }
 0x204   :  { %v1257_v10 = vpop.f32.mrf.mxu1 }
 0x205   :  { %1840 = vst [vmem:[#allocation2 + $0x90] sm:$0xff] %v1808_v49  ;;  %v1312_v25 = vadd.f32 %v1257_v10, %v825_v56 }
 0x207   :  { %v2497_v29 = vpop.f32.mrf.mxu1 }
 0x208   :  { %v1315_v46 = vadd.f32 %v2497_v29, %v840_v41 }
 0x209   :  { %v1267_v1 = vpop.f32.mrf.mxu1 }
 0x20a   :  { %v1314_v26 = vadd.f32 %v1267_v1, %v835_v33 }
 0x20f   :  { %v2565_v37 = vpop.f32.mrf.mxu0 }
 0x210   :  { %v1772_v3 = vadd.f32 %v2565_v37, %v1307_v47  ;;  %v3826_v37 = vld [vmem:[#allocation14_spill] sm:$0xff] }
 0x211   :  { %v1692_v27 = vpop.f32.mrf.mxu0 }
 0x212   :  { %v1811_v60 = vadd.f32 %v3701_v32, %v1772_v3  ;;  %v1771_v15 = vadd.f32 %v1692_v27, %v1306_v54  ;;  %v850_v54 = vadd.f32 %v3826_v37, %v3825_v30 }
 0x214   :  { %1843 = vst [vmem:[#allocation2 + $0xa8] sm:$0xff] %v1811_v60  ;;  %v1810_v51 = vadd.f32 %v3701_v32, %v1771_v15 }
 0x216   :  { %1842 = vst [vmem:[#allocation2 + $0xa0] sm:$0xff] %v1810_v51 }
 0x218   :  { %v2500_v2 = vpop.f32.mrf.mxu1 }
 0x219   :  { %v1317_v27 = vadd.f32 %v2500_v2, %v850_v54 }
 0x21a   :  { %v1277_v43 = vpop.f32.mrf.mxu1 }
 0x21b   :  { %v1316_v15 = vadd.f32 %v1277_v43, %v3694_v40 }
 0x21d   :  { %v2568_v19 = vpop.f32.mrf.mxu0 }
 0x21e   :  { %v1774_v16 = vadd.f32 %v2568_v19, %v1309_v11 }
 0x21f   :  { %v1702_v39 = vpop.f32.mrf.mxu0 }
 0x220   :  { %v1813_v53 = vadd.f32 %v3701_v32, %v1774_v16  ;;  %v1773_v50 = vadd.f32 %v1702_v39, %v1308_v57 }
 0x221   :  { %v2571_v7 = vpop.f32.mrf.mxu0 }
 0x222   :  { %1845 = vst [vmem:[#allocation2 + $0xb8] sm:$0xff] %v1813_v53  ;;  %v1812_v12 = vadd.f32 %v3701_v32, %v1773_v50  ;;  %v1776_v14 = vadd.f32 %v2571_v7, %v1311_v9 }
 0x223   :  { %v1712_v44 = vpop.f32.mrf.mxu0 }
 0x224   :  { %1844 = vst [vmem:[#allocation2 + $0xb0] sm:$0xff] %v1812_v12  ;;  %v1815_v63 = vadd.f32 %v3701_v32, %v1776_v14  ;;  %v1775_v52 = vadd.f32 %v1712_v44, %v1310_v34 }
 0x225   :  { %v2574_v20 = vpop.f32.mrf.mxu0  ;;  %v2577_v31 = vpop.f32.mrf.mxu1 }
 0x226   :  { %1847 = vst [vmem:[#allocation2 + $0xc8] sm:$0xff] %v1815_v63  ;;  %v1814_v22 = vadd.f32 %v3701_v32, %v1775_v52  ;;  %v1778_v58 = vadd.f32 %v2574_v20, %v1313_v21  ;;  %v1780_v49 = vadd.f32 %v2577_v31, %v1315_v46 }
 0x227   :  { %v1722_v17 = vpop.f32.mrf.mxu0  ;;  %v1732_v23 = vpop.f32.mrf.mxu1 }
 0x228   :  { %1846 = vst [vmem:[#allocation2 + $0xc0] sm:$0xff] %v1814_v22  ;;  %v1817_v62 = vadd.f32 %v3701_v32, %v1778_v58  ;;  %v1819_v48 = vadd.f32 %v3701_v32, %v1780_v49  ;;  %v1777_v8 = vadd.f32 %v1722_v17, %v1312_v25  ;;  %v1779_v47 = vadd.f32 %v1732_v23, %v1314_v26 }
 0x22a   :  { %1849 = vst [vmem:[#allocation2 + $0xd8] sm:$0xff] %v1817_v62  ;;  %1851 = vst [vmem:[#allocation2 + $0xe8] sm:$0xff] %v1819_v48  ;;  %v1816_v3 = vadd.f32 %v3701_v32, %v1777_v8  ;;  %v1818_v5 = vadd.f32 %v3701_v32, %v1779_v47 }
 0x22c   :  { %1848 = vst [vmem:[#allocation2 + $0xd0] sm:$0xff] %v1816_v3  ;;  %1850 = vst [vmem:[#allocation2 + $0xe0] sm:$0xff] %v1818_v5 }
 0x22d   :  { %v2580_v60 = vpop.f32.mrf.mxu1 }
 0x22e   :  { %v1782_v51 = vadd.f32 %v2580_v60, %v1317_v27 }
 0x22f   :  { %v1742_v10 = vpop.f32.mrf.mxu1 }
 0x230   :  { %v1821_v29 = vadd.f32 %v3701_v32, %v1782_v51  ;;  %v1781_v28 = vadd.f32 %v1742_v10, %v1316_v15 }
 0x232   :  { %1853 = vst [vmem:[#allocation2 + $0xf8] sm:$0xff] %v1821_v29  ;;  %v1820_v38 = vadd.f32 %v3701_v32, %v1781_v28 }
 0x234   :  { %1852 = vst [vmem:[#allocation2 + $0xf0] sm:$0xff] %v1820_v38 }
 0x235   :  { %2654 = shalt.err (!%p2651_p4)
}
 0x236   :  { %s2670_s23 = smov 128   ;;  %s2671_s24 = smov 8  }
 0x237   :  { %1865 = dma.vmem_to_hbm [thread:$0]  %s1860_s21, 4096, %s3802_s5, [#allocation3], %s2670_s23, %s2670_s23, %s2671_s24  }
 0x238   :  { %2663 = dma.done.wait [#allocation3], 4096  }
 0x239   :  { %2664 = vsyncadd [#allocation3], 4294963200 }
 0x23a   :  { %1869 = vsyncpa [#allocation3], 1 }

</bundles_post_ra>
